<compile_context>
chip_gen: v6e
topology: v6e:2x2x1
jax: 0.10.0
libtpu: 0.0.40
codegen_flags: <defaults>
</compile_context>

<pallas_src>
import jax
import jax.numpy as jnp
from jax.experimental import pallas as pl
from jax.experimental.pallas import tpu as pltpu


def _down_conv_kernel(xph_ref, w1_ref, b1_ref, w2_ref, b2_ref, o_ref, mid_ref):
    """Fused conv3x3(s2)+BN+LReLU -> conv3x3(s1)+BN+LReLU for one batch element.

    xph_ref : (1, 4, Ho+1, Wo+1, Cin)  2x2 phase-split, zero-padded input
    w1_ref  : (9, Cin, C1)             BN1-folded tap weights (tap-major)
    b1_ref  : (1, C1)                  BN1-folded bias (f32)
    w2_ref  : (9, C1, C2)              BN2-folded tap weights
    b2_ref  : (1, C2)
    o_ref   : (1, Ho, Wo, C2)
    mid_ref : VMEM scratch (Ho+2, Wo+2, C1), stage-1 activation zero-padded
    """
    _, Ho, Wo, C2 = o_ref.shape
    Cin = xph_ref.shape[-1]
    C1 = w1_ref.shape[-1]

    # ---- stage 1: stride-2 conv = 9 accumulated phase-window matmuls ----
    acc1 = jnp.zeros((Ho * Wo, C1), jnp.float32)
    for ky in range(3):
        for kx in range(3):
            p = (ky % 2) * 2 + (kx % 2)          # phase index
            oy, ox = ky // 2, kx // 2            # offset inside the phase
            win = xph_ref[0, p, oy:oy + Ho, ox:ox + Wo, :]
            acc1 = acc1 + jnp.dot(win.reshape(Ho * Wo, Cin),
                                  w1_ref[ky * 3 + kx],
                                  preferred_element_type=jnp.float32)
    y1 = acc1 + b1_ref[...]
    y1 = jnp.maximum(y1, 0.2 * y1)               # LeakyReLU(0.2) as single max

    # Stage-1 activation stays in VMEM, zero-padded border = stage-2 padding=1.
    mid_ref[...] = jnp.zeros_like(mid_ref)
    mid_ref[1:1 + Ho, 1:1 + Wo, :] = y1.reshape(Ho, Wo, C1).astype(mid_ref.dtype)

    # ---- stage 2: stride-1 conv on the VMEM-resident intermediate ----
    acc2 = jnp.zeros((Ho * Wo, C2), jnp.float32)
    for ky in range(3):
        for kx in range(3):
            win = mid_ref[ky:ky + Ho, kx:kx + Wo, :]
            acc2 = acc2 + jnp.dot(win.reshape(Ho * Wo, C1),
                                  w2_ref[ky * 3 + kx],
                                  preferred_element_type=jnp.float32)
    y2 = acc2 + b2_ref[...]
    y2 = jnp.maximum(y2, 0.2 * y2)
    o_ref[...] = y2.reshape(1, Ho, Wo, C2).astype(o_ref.dtype)


def _fold_bn(w_oihw, b, gamma, beta, mean, var, eps):
    """Fold eval-mode BN into conv weights/bias. Fold is done in f32."""
    cout, cin = w_oihw.shape[0], w_oihw.shape[1]
    s = gamma / jnp.sqrt(var + eps)
    w_taps = jnp.transpose(w_oihw, (2, 3, 1, 0)).reshape(9, cin, cout) * s
    bias = (b - mean) * s + beta
    return w_taps, bias.reshape(1, cout)


def down_conv_forward(x_nchw, params, matmul_dtype=jnp.bfloat16, eps=1e-5):
    x = jnp.transpose(x_nchw, (0, 2, 3, 1))      # NCHW -> NHWC
    N, H, W, Cin = x.shape
    out_dtype = x.dtype

    C1 = params["w1"].shape[0]
    C2 = params["w2"].shape[0]
    Ho = (H - 1) // 2 + 1                        # conv k3 s2 p1
    Wo = (W - 1) // 2 + 1
    HP, WP = Ho + 1, Wo + 1

    # 2x2 phase split of the pad=1 padded input (one relayout pass, replaces
    # the old 9x im2col HBM expansion). phase[py*2+px][i,j] = xpad[2i+py, 2j+px]
    xp = jnp.pad(x, ((0, 0), (1, 2 * HP - (H + 1)), (1, 2 * WP - (W + 1)), (0, 0)))
    xph = (xp.reshape(N, HP, 2, WP, 2, Cin)
             .transpose(0, 2, 4, 1, 3, 5)
             .reshape(N, 4, HP, WP, Cin)
             .astype(matmul_dtype))

    w1, b1 = _fold_bn(params["w1"], params["b1"], params["g1"], params["be1"],
                      params["m1"], params["v1"], eps)
    w2, b2 = _fold_bn(params["w2"], params["b2"], params["g2"], params["be2"],
                      params["m2"], params["v2"], eps)
    w1 = w1.astype(matmul_dtype)
    w2 = w2.astype(matmul_dtype)
    b1 = b1.astype(jnp.float32)
    b2 = b2.astype(jnp.float32)

    in_b = jnp.dtype(matmul_dtype).itemsize
    out_b = jnp.dtype(out_dtype).itemsize

    # VMEM sizing: every input BlockSpec is double-buffered by Pallas (weights
    # included), plus the output block, the mid scratch and f32 accumulators.
    per_step = (
        2 * 4 * HP * WP * Cin * in_b                       # phase block (pipelined)
        + 2 * 9 * (Cin * C1 + C1 * C2) * in_b              # resident weights (x2 buf)
        + 2 * (C1 + C2) * 4                                # biases
        + 2 * Ho * Wo * C2 * out_b                         # output block
        + (Ho + 2) * (Wo + 2) * C1 * in_b                  # mid scratch
        + 2 * Ho * Wo * (C1 + C2) * 4)                     # f32 accumulators + slop
    try:
        vmem_cap = int(getattr(pltpu.get_tpu_info(), "vmem_capacity_bytes",
                               64 * 2 ** 20))
    except Exception:
        vmem_cap = 64 * 2 ** 20                            # conservative (v7x)
    vmem_limit = int(min(max(2 * per_step, 32 * 2 ** 20), vmem_cap * 3 // 4))

    cost = pl.CostEstimate(
        flops=2 * N * Ho * Wo * 9 * (Cin * C1 + C1 * C2),
        transcendentals=0,
        bytes_accessed=(xph.size * in_b + (w1.size + w2.size) * in_b
                        + N * Ho * Wo * C2 * out_b))

    out = pl.pallas_call(
        _down_conv_kernel,
        out_shape=jax.ShapeDtypeStruct((N, Ho, Wo, C2), out_dtype),
        grid=(N,),
        in_specs=[
            pl.BlockSpec((1, 4, HP, WP, Cin), lambda n: (n, 0, 0, 0, 0)),
            pl.BlockSpec((9, Cin, C1), lambda n: (0, 0, 0)),
            pl.BlockSpec((1, C1), lambda n: (0, 0)),
            pl.BlockSpec((9, C1, C2), lambda n: (0, 0, 0)),
            pl.BlockSpec((1, C2), lambda n: (0, 0)),
        ],
        out_specs=pl.BlockSpec((1, Ho, Wo, C2), lambda n: (n, 0, 0, 0)),
        scratch_shapes=[pltpu.VMEM((Ho + 2, Wo + 2, C1), matmul_dtype)],
        compiler_params=pltpu.CompilerParams(
            dimension_semantics=("parallel",),
            vmem_limit_bytes=vmem_limit),
        cost_estimate=cost,
    )(xph, w1, b1, w2, b2)

    return jnp.transpose(out, (0, 3, 1, 2))      # NHWC -> NCHW


def _ref_forward(x, p, eps=1e-5):
    """Pure-JAX reference (lax conv) for correctness checking."""
    def conv(x, w, b, s):
        y = jax.lax.conv_general_dilated(
            x, w, (s, s), ((1, 1), (1, 1)),
            dimension_numbers=("NCHW", "OIHW", "NCHW"))
        return y + b[None, :, None, None]

    def bn(x, g, be, m, v):
        return ((x - m[None, :, None, None]) /
                jnp.sqrt(v[None, :, None, None] + eps) *
                g[None, :, None, None] + be[None, :, None, None])

    def lrelu(x):
        return jnp.where(x >= 0, x, 0.2 * x)

    y = lrelu(bn(conv(x, p["w1"], p["b1"], 2), p["g1"], p["be1"], p["m1"], p["v1"]))
    y = lrelu(bn(conv(y, p["w2"], p["b2"], 1), p["g2"], p["be2"], p["m2"], p["v2"]))
    return y


def make_params(key, cin, cout):
    ks = jax.random.split(key, 4)
    return {
        "w1": 0.1 * jax.random.normal(ks[0], (cout, cin, 3, 3), jnp.float32),
        "b1": 0.05 * jax.random.normal(ks[1], (cout,), jnp.float32),
        "g1": 1.0 + 0.1 * jnp.arange(cout, dtype=jnp.float32) / cout,
        "be1": 0.01 * jnp.arange(cout, dtype=jnp.float32),
        "m1": 0.02 * jnp.arange(cout, dtype=jnp.float32),
        "v1": 1.0 + 0.05 * jnp.arange(cout, dtype=jnp.float32),
        "w2": 0.1 * jax.random.normal(ks[2], (cout, cout, 3, 3), jnp.float32),
        "b2": 0.05 * jax.random.normal(ks[3], (cout,), jnp.float32),
        "g2": 1.0 - 0.05 * jnp.arange(cout, dtype=jnp.float32) / cout,
        "be2": -0.01 * jnp.arange(cout, dtype=jnp.float32),
        "m2": -0.02 * jnp.arange(cout, dtype=jnp.float32),
        "v2": 1.0 + 0.03 * jnp.arange(cout, dtype=jnp.float32),
    }


if __name__ == "__main__":
    key = jax.random.PRNGKey(0)
    kx, kp = jax.random.split(key)

    N, Cin, Cout, H, W = 2, 4, 8, 16, 16
    x = jax.random.normal(kx, (N, Cin, H, W), jnp.float32)
    params = make_params(kp, Cin, Cout)

    ref = jax.block_until_ready(_ref_forward(x, params))

    # f32 matmul operands: tight check of the fused structure.
    out_f32 = jax.block_until_ready(
        down_conv_forward(x, params, matmul_dtype=jnp.float32))
    assert out_f32.shape == (N, Cout, H // 2, W // 2), out_f32.shape
    assert jnp.allclose(out_f32, ref, atol=1e-3, rtol=1e-3), (
        float(jnp.max(jnp.abs(out_f32 - ref))))

    # bf16 matmul operands / bf16 VMEM intermediate: perf path, looser tol.
    out_bf16 = jax.block_until_ready(
        down_conv_forward(x, params, matmul_dtype=jnp.bfloat16))
    assert out_bf16.shape == (N, Cout, H // 2, W // 2), out_bf16.shape
    assert jnp.allclose(out_bf16, ref, atol=5e-2, rtol=5e-2), (
        float(jnp.max(jnp.abs(out_bf16 - ref))))

    print("KERNEL_OK")
</pallas_src>

<mosaic_0001>
module attributes {stable_mosaic.version = 11 : i64} {
  func.func @_down_conv_kernel(%arg0: i32, %arg1: memref<1x4x9x9x4xf32, #tpu.memory_space<vmem>>, %arg2: memref<9x4x8xf32, #tpu.memory_space<vmem>>, %arg3: memref<1x8xf32, #tpu.memory_space<vmem>>, %arg4: memref<9x8x8xf32, #tpu.memory_space<vmem>>, %arg5: memref<1x8xf32, #tpu.memory_space<vmem>>, %arg6: memref<1x8x8x8xf32, #tpu.memory_space<vmem>>, %arg7: memref<10x10x8xf32, #tpu.memory_space<vmem>>) attributes {dimension_semantics = [#tpu.dimension_semantics<parallel>], iteration_bounds = array<i64: 2>, scalar_prefetch = 0 : i64, scratch_operands = 1 : i64, tpu.core_type = #tpu.core_type<tc>, window_params = [{transform_indices = @transform_0, window_bounds = array<i64: 1, 4, 9, 9, 4>}, {pipeline_mode = #tpu.pipeline_mode<synchronous>, transform_indices = @transform_1, window_bounds = array<i64: 9, 4, 8>}, {pipeline_mode = #tpu.pipeline_mode<synchronous>, transform_indices = @transform_2, window_bounds = array<i64: 1, 8>}, {pipeline_mode = #tpu.pipeline_mode<synchronous>, transform_indices = @transform_3, window_bounds = array<i64: 9, 8, 8>}, {pipeline_mode = #tpu.pipeline_mode<synchronous>, transform_indices = @transform_4, window_bounds = array<i64: 1, 8>}, {transform_indices = @transform_5, window_bounds = array<i64: 1, 8, 8, 8>}]} {
    %cst = arith.constant 0.000000e+00 : f32
    %0 = vector.broadcast %cst : f32 to vector<64x8xf32>
    %c0 = arith.constant 0 : index
    %c0_0 = arith.constant 0 : index
    %c0_1 = arith.constant 0 : index
    %c0_2 = arith.constant 0 : index
    %c0_3 = arith.constant 0 : index
    %1 = vector.load %arg1[%c0, %c0_0, %c0_1, %c0_2, %c0_3] : memref<1x4x9x9x4xf32, #tpu.memory_space<vmem>>, vector<1x1x8x8x4xf32>
    %2 = vector.shape_cast %1 : vector<1x1x8x8x4xf32> to vector<8x8x4xf32>
    %3 = vector.shape_cast %2 : vector<8x8x4xf32> to vector<64x4xf32>
    %c0_4 = arith.constant 0 : index
    %c0_5 = arith.constant 0 : index
    %c0_6 = arith.constant 0 : index
    %4 = vector.load %arg2[%c0_4, %c0_5, %c0_6] : memref<9x4x8xf32, #tpu.memory_space<vmem>>, vector<1x4x8xf32>
    %5 = vector.shape_cast %4 : vector<1x4x8xf32> to vector<4x8xf32>
    %cst_7 = arith.constant dense<0.000000e+00> : vector<64x8xf32>
    %6 = tpu.matmul %3, %5, %cst_7 {dimension_numbers = #tpu.dot_dimension_numbers<[1], [0], [0], [1], [0, 0, 1, 1], [], []>} : vector<64x4xf32>, vector<4x8xf32>, vector<64x8xf32> -> vector<64x8xf32>
    %7 = arith.addf %0, %6 : vector<64x8xf32>
    %c0_8 = arith.constant 0 : index
    %c1 = arith.constant 1 : index
    %c0_9 = arith.constant 0 : index
    %c0_10 = arith.constant 0 : index
    %c0_11 = arith.constant 0 : index
    %8 = vector.load %arg1[%c0_8, %c1, %c0_9, %c0_10, %c0_11] : memref<1x4x9x9x4xf32, #tpu.memory_space<vmem>>, vector<1x1x8x8x4xf32>
    %9 = vector.shape_cast %8 : vector<1x1x8x8x4xf32> to vector<8x8x4xf32>
    %10 = vector.shape_cast %9 : vector<8x8x4xf32> to vector<64x4xf32>
    %c1_12 = arith.constant 1 : index
    %c0_13 = arith.constant 0 : index
    %c0_14 = arith.constant 0 : index
    %11 = vector.load %arg2[%c1_12, %c0_13, %c0_14] : memref<9x4x8xf32, #tpu.memory_space<vmem>>, vector<1x4x8xf32>
    %12 = vector.shape_cast %11 : vector<1x4x8xf32> to vector<4x8xf32>
    %cst_15 = arith.constant dense<0.000000e+00> : vector<64x8xf32>
    %13 = tpu.matmul %10, %12, %cst_15 {dimension_numbers = #tpu.dot_dimension_numbers<[1], [0], [0], [1], [0, 0, 1, 1], [], []>} : vector<64x4xf32>, vector<4x8xf32>, vector<64x8xf32> -> vector<64x8xf32>
    %14 = arith.addf %7, %13 : vector<64x8xf32>
    %c0_16 = arith.constant 0 : index
    %c0_17 = arith.constant 0 : index
    %c0_18 = arith.constant 0 : index
    %c1_19 = arith.constant 1 : index
    %c0_20 = arith.constant 0 : index
    %15 = vector.load %arg1[%c0_16, %c0_17, %c0_18, %c1_19, %c0_20] : memref<1x4x9x9x4xf32, #tpu.memory_space<vmem>>, vector<1x1x8x8x4xf32>
    %16 = vector.shape_cast %15 : vector<1x1x8x8x4xf32> to vector<8x8x4xf32>
    %17 = vector.shape_cast %16 : vector<8x8x4xf32> to vector<64x4xf32>
    %c2 = arith.constant 2 : index
    %c0_21 = arith.constant 0 : index
    %c0_22 = arith.constant 0 : index
    %18 = vector.load %arg2[%c2, %c0_21, %c0_22] : memref<9x4x8xf32, #tpu.memory_space<vmem>>, vector<1x4x8xf32>
    %19 = vector.shape_cast %18 : vector<1x4x8xf32> to vector<4x8xf32>
    %cst_23 = arith.constant dense<0.000000e+00> : vector<64x8xf32>
    %20 = tpu.matmul %17, %19, %cst_23 {dimension_numbers = #tpu.dot_dimension_numbers<[1], [0], [0], [1], [0, 0, 1, 1], [], []>} : vector<64x4xf32>, vector<4x8xf32>, vector<64x8xf32> -> vector<64x8xf32>
    %21 = arith.addf %14, %20 : vector<64x8xf32>
    %c0_24 = arith.constant 0 : index
    %c2_25 = arith.constant 2 : index
    %c0_26 = arith.constant 0 : index
    %c0_27 = arith.constant 0 : index
    %c0_28 = arith.constant 0 : index
    %22 = vector.load %arg1[%c0_24, %c2_25, %c0_26, %c0_27, %c0_28] : memref<1x4x9x9x4xf32, #tpu.memory_space<vmem>>, vector<1x1x8x8x4xf32>
    %23 = vector.shape_cast %22 : vector<1x1x8x8x4xf32> to vector<8x8x4xf32>
    %24 = vector.shape_cast %23 : vector<8x8x4xf32> to vector<64x4xf32>
    %c3 = arith.constant 3 : index
    %c0_29 = arith.constant 0 : index
    %c0_30 = arith.constant 0 : index
    %25 = vector.load %arg2[%c3, %c0_29, %c0_30] : memref<9x4x8xf32, #tpu.memory_space<vmem>>, vector<1x4x8xf32>
    %26 = vector.shape_cast %25 : vector<1x4x8xf32> to vector<4x8xf32>
    %cst_31 = arith.constant dense<0.000000e+00> : vector<64x8xf32>
    %27 = tpu.matmul %24, %26, %cst_31 {dimension_numbers = #tpu.dot_dimension_numbers<[1], [0], [0], [1], [0, 0, 1, 1], [], []>} : vector<64x4xf32>, vector<4x8xf32>, vector<64x8xf32> -> vector<64x8xf32>
    %28 = arith.addf %21, %27 : vector<64x8xf32>
    %c0_32 = arith.constant 0 : index
    %c3_33 = arith.constant 3 : index
    %c0_34 = arith.constant 0 : index
    %c0_35 = arith.constant 0 : index
    %c0_36 = arith.constant 0 : index
    %29 = vector.load %arg1[%c0_32, %c3_33, %c0_34, %c0_35, %c0_36] : memref<1x4x9x9x4xf32, #tpu.memory_space<vmem>>, vector<1x1x8x8x4xf32>
    %30 = vector.shape_cast %29 : vector<1x1x8x8x4xf32> to vector<8x8x4xf32>
    %31 = vector.shape_cast %30 : vector<8x8x4xf32> to vector<64x4xf32>
    %c4 = arith.constant 4 : index
    %c0_37 = arith.constant 0 : index
    %c0_38 = arith.constant 0 : index
    %32 = vector.load %arg2[%c4, %c0_37, %c0_38] : memref<9x4x8xf32, #tpu.memory_space<vmem>>, vector<1x4x8xf32>
    %33 = vector.shape_cast %32 : vector<1x4x8xf32> to vector<4x8xf32>
    %cst_39 = arith.constant dense<0.000000e+00> : vector<64x8xf32>
    %34 = tpu.matmul %31, %33, %cst_39 {dimension_numbers = #tpu.dot_dimension_numbers<[1], [0], [0], [1], [0, 0, 1, 1], [], []>} : vector<64x4xf32>, vector<4x8xf32>, vector<64x8xf32> -> vector<64x8xf32>
    %35 = arith.addf %28, %34 : vector<64x8xf32>
    %c0_40 = arith.constant 0 : index
    %c2_41 = arith.constant 2 : index
    %c0_42 = arith.constant 0 : index
    %c1_43 = arith.constant 1 : index
    %c0_44 = arith.constant 0 : index
    %36 = vector.load %arg1[%c0_40, %c2_41, %c0_42, %c1_43, %c0_44] : memref<1x4x9x9x4xf32, #tpu.memory_space<vmem>>, vector<1x1x8x8x4xf32>
    %37 = vector.shape_cast %36 : vector<1x1x8x8x4xf32> to vector<8x8x4xf32>
    %38 = vector.shape_cast %37 : vector<8x8x4xf32> to vector<64x4xf32>
    %c5 = arith.constant 5 : index
    %c0_45 = arith.constant 0 : index
    %c0_46 = arith.constant 0 : index
    %39 = vector.load %arg2[%c5, %c0_45, %c0_46] : memref<9x4x8xf32, #tpu.memory_space<vmem>>, vector<1x4x8xf32>
    %40 = vector.shape_cast %39 : vector<1x4x8xf32> to vector<4x8xf32>
    %cst_47 = arith.constant dense<0.000000e+00> : vector<64x8xf32>
    %41 = tpu.matmul %38, %40, %cst_47 {dimension_numbers = #tpu.dot_dimension_numbers<[1], [0], [0], [1], [0, 0, 1, 1], [], []>} : vector<64x4xf32>, vector<4x8xf32>, vector<64x8xf32> -> vector<64x8xf32>
    %42 = arith.addf %35, %41 : vector<64x8xf32>
    %c0_48 = arith.constant 0 : index
    %c0_49 = arith.constant 0 : index
    %c1_50 = arith.constant 1 : index
    %c0_51 = arith.constant 0 : index
    %c0_52 = arith.constant 0 : index
    %43 = vector.load %arg1[%c0_48, %c0_49, %c1_50, %c0_51, %c0_52] : memref<1x4x9x9x4xf32, #tpu.memory_space<vmem>>, vector<1x1x8x8x4xf32>
    %44 = vector.shape_cast %43 : vector<1x1x8x8x4xf32> to vector<8x8x4xf32>
    %45 = vector.shape_cast %44 : vector<8x8x4xf32> to vector<64x4xf32>
    %c6 = arith.constant 6 : index
    %c0_53 = arith.constant 0 : index
    %c0_54 = arith.constant 0 : index
    %46 = vector.load %arg2[%c6, %c0_53, %c0_54] : memref<9x4x8xf32, #tpu.memory_space<vmem>>, vector<1x4x8xf32>
    %47 = vector.shape_cast %46 : vector<1x4x8xf32> to vector<4x8xf32>
    %cst_55 = arith.constant dense<0.000000e+00> : vector<64x8xf32>
    %48 = tpu.matmul %45, %47, %cst_55 {dimension_numbers = #tpu.dot_dimension_numbers<[1], [0], [0], [1], [0, 0, 1, 1], [], []>} : vector<64x4xf32>, vector<4x8xf32>, vector<64x8xf32> -> vector<64x8xf32>
    %49 = arith.addf %42, %48 : vector<64x8xf32>
    %c0_56 = arith.constant 0 : index
    %c1_57 = arith.constant 1 : index
    %c1_58 = arith.constant 1 : index
    %c0_59 = arith.constant 0 : index
    %c0_60 = arith.constant 0 : index
    %50 = vector.load %arg1[%c0_56, %c1_57, %c1_58, %c0_59, %c0_60] : memref<1x4x9x9x4xf32, #tpu.memory_space<vmem>>, vector<1x1x8x8x4xf32>
    %51 = vector.shape_cast %50 : vector<1x1x8x8x4xf32> to vector<8x8x4xf32>
    %52 = vector.shape_cast %51 : vector<8x8x4xf32> to vector<64x4xf32>
    %c7 = arith.constant 7 : index
    %c0_61 = arith.constant 0 : index
    %c0_62 = arith.constant 0 : index
    %53 = vector.load %arg2[%c7, %c0_61, %c0_62] : memref<9x4x8xf32, #tpu.memory_space<vmem>>, vector<1x4x8xf32>
    %54 = vector.shape_cast %53 : vector<1x4x8xf32> to vector<4x8xf32>
    %cst_63 = arith.constant dense<0.000000e+00> : vector<64x8xf32>
    %55 = tpu.matmul %52, %54, %cst_63 {dimension_numbers = #tpu.dot_dimension_numbers<[1], [0], [0], [1], [0, 0, 1, 1], [], []>} : vector<64x4xf32>, vector<4x8xf32>, vector<64x8xf32> -> vector<64x8xf32>
    %56 = arith.addf %49, %55 : vector<64x8xf32>
    %c0_64 = arith.constant 0 : index
    %c0_65 = arith.constant 0 : index
    %c1_66 = arith.constant 1 : index
    %c1_67 = arith.constant 1 : index
    %c0_68 = arith.constant 0 : index
    %57 = vector.load %arg1[%c0_64, %c0_65, %c1_66, %c1_67, %c0_68] : memref<1x4x9x9x4xf32, #tpu.memory_space<vmem>>, vector<1x1x8x8x4xf32>
    %58 = vector.shape_cast %57 : vector<1x1x8x8x4xf32> to vector<8x8x4xf32>
    %59 = vector.shape_cast %58 : vector<8x8x4xf32> to vector<64x4xf32>
    %c8 = arith.constant 8 : index
    %c0_69 = arith.constant 0 : index
    %c0_70 = arith.constant 0 : index
    %60 = vector.load %arg2[%c8, %c0_69, %c0_70] : memref<9x4x8xf32, #tpu.memory_space<vmem>>, vector<1x4x8xf32>
    %61 = vector.shape_cast %60 : vector<1x4x8xf32> to vector<4x8xf32>
    %cst_71 = arith.constant dense<0.000000e+00> : vector<64x8xf32>
    %62 = tpu.matmul %59, %61, %cst_71 {dimension_numbers = #tpu.dot_dimension_numbers<[1], [0], [0], [1], [0, 0, 1, 1], [], []>} : vector<64x4xf32>, vector<4x8xf32>, vector<64x8xf32> -> vector<64x8xf32>
    %63 = arith.addf %56, %62 : vector<64x8xf32>
    %c0_72 = arith.constant 0 : index
    %c0_73 = arith.constant 0 : index
    %64 = vector.load %arg3[%c0_72, %c0_73] : memref<1x8xf32, #tpu.memory_space<vmem>>, vector<1x8xf32>
    %65 = vector.broadcast %64 : vector<1x8xf32> to vector<64x8xf32>
    %66 = arith.addf %63, %65 : vector<64x8xf32>
    %cst_74 = arith.constant 2.000000e-01 : f32
    %67 = vector.broadcast %cst_74 : f32 to vector<64x8xf32>
    %68 = arith.mulf %67, %66 : vector<64x8xf32>
    %69 = arith.maximumf %66, %68 : vector<64x8xf32>
    %cst_75 = arith.constant 0.000000e+00 : f32
    %70 = vector.broadcast %cst_75 : f32 to vector<10x10x8xf32>
    %c0_76 = arith.constant 0 : index
    %c0_77 = arith.constant 0 : index
    %c0_78 = arith.constant 0 : index
    %71 = vector.load %arg7[%c0_76, %c0_77, %c0_78] : memref<10x10x8xf32, #tpu.memory_space<vmem>>, vector<10x10x8xf32>
    tpu.vector_store %arg7[%c0_76, %c0_77, %c0_78], %70 {strides = array<i32>} : memref<10x10x8xf32, #tpu.memory_space<vmem>>, vector<10x10x8xf32>,
    %72 = vector.shape_cast %69 : vector<64x8xf32> to vector<8x8x8xf32>
    %c1_79 = arith.constant 1 : index
    %c1_80 = arith.constant 1 : index
    %c0_81 = arith.constant 0 : index
    %73 = vector.load %arg7[%c1_79, %c1_80, %c0_81] : memref<10x10x8xf32, #tpu.memory_space<vmem>>, vector<8x8x8xf32>
    tpu.vector_store %arg7[%c1_79, %c1_80, %c0_81], %72 {strides = array<i32>} : memref<10x10x8xf32, #tpu.memory_space<vmem>>, vector<8x8x8xf32>,
    %cst_82 = arith.constant 0.000000e+00 : f32
    %74 = vector.broadcast %cst_82 : f32 to vector<64x8xf32>
    %c0_83 = arith.constant 0 : index
    %c0_84 = arith.constant 0 : index
    %c0_85 = arith.constant 0 : index
    %75 = vector.load %arg7[%c0_83, %c0_84, %c0_85] : memref<10x10x8xf32, #tpu.memory_space<vmem>>, vector<8x8x8xf32>
    %76 = vector.shape_cast %75 : vector<8x8x8xf32> to vector<64x8xf32>
    %c0_86 = arith.constant 0 : index
    %c0_87 = arith.constant 0 : index
    %c0_88 = arith.constant 0 : index
    %77 = vector.load %arg4[%c0_86, %c0_87, %c0_88] : memref<9x8x8xf32, #tpu.memory_space<vmem>>, vector<1x8x8xf32>
    %78 = vector.shape_cast %77 : vector<1x8x8xf32> to vector<8x8xf32>
    %cst_89 = arith.constant dense<0.000000e+00> : vector<64x8xf32>
    %79 = tpu.matmul %76, %78, %cst_89 {dimension_numbers = #tpu.dot_dimension_numbers<[1], [0], [0], [1], [0, 0, 1, 1], [], []>} : vector<64x8xf32>, vector<8x8xf32>, vector<64x8xf32> -> vector<64x8xf32>
    %80 = arith.addf %74, %79 : vector<64x8xf32>
    %c0_90 = arith.constant 0 : index
    %c1_91 = arith.constant 1 : index
    %c0_92 = arith.constant 0 : index
    %81 = vector.load %arg7[%c0_90, %c1_91, %c0_92] : memref<10x10x8xf32, #tpu.memory_space<vmem>>, vector<8x8x8xf32>
    %82 = vector.shape_cast %81 : vector<8x8x8xf32> to vector<64x8xf32>
    %c1_93 = arith.constant 1 : index
    %c0_94 = arith.constant 0 : index
    %c0_95 = arith.constant 0 : index
    %83 = vector.load %arg4[%c1_93, %c0_94, %c0_95] : memref<9x8x8xf32, #tpu.memory_space<vmem>>, vector<1x8x8xf32>
    %84 = vector.shape_cast %83 : vector<1x8x8xf32> to vector<8x8xf32>
    %cst_96 = arith.constant dense<0.000000e+00> : vector<64x8xf32>
    %85 = tpu.matmul %82, %84, %cst_96 {dimension_numbers = #tpu.dot_dimension_numbers<[1], [0], [0], [1], [0, 0, 1, 1], [], []>} : vector<64x8xf32>, vector<8x8xf32>, vector<64x8xf32> -> vector<64x8xf32>
    %86 = arith.addf %80, %85 : vector<64x8xf32>
    %c0_97 = arith.constant 0 : index
    %c2_98 = arith.constant 2 : index
    %c0_99 = arith.constant 0 : index
    %87 = vector.load %arg7[%c0_97, %c2_98, %c0_99] : memref<10x10x8xf32, #tpu.memory_space<vmem>>, vector<8x8x8xf32>
    %88 = vector.shape_cast %87 : vector<8x8x8xf32> to vector<64x8xf32>
    %c2_100 = arith.constant 2 : index
    %c0_101 = arith.constant 0 : index
    %c0_102 = arith.constant 0 : index
    %89 = vector.load %arg4[%c2_100, %c0_101, %c0_102] : memref<9x8x8xf32, #tpu.memory_space<vmem>>, vector<1x8x8xf32>
    %90 = vector.shape_cast %89 : vector<1x8x8xf32> to vector<8x8xf32>
    %cst_103 = arith.constant dense<0.000000e+00> : vector<64x8xf32>
    %91 = tpu.matmul %88, %90, %cst_103 {dimension_numbers = #tpu.dot_dimension_numbers<[1], [0], [0], [1], [0, 0, 1, 1], [], []>} : vector<64x8xf32>, vector<8x8xf32>, vector<64x8xf32> -> vector<64x8xf32>
    %92 = arith.addf %86, %91 : vector<64x8xf32>
    %c1_104 = arith.constant 1 : index
    %c0_105 = arith.constant 0 : index
    %c0_106 = arith.constant 0 : index
    %93 = vector.load %arg7[%c1_104, %c0_105, %c0_106] : memref<10x10x8xf32, #tpu.memory_space<vmem>>, vector<8x8x8xf32>
    %94 = vector.shape_cast %93 : vector<8x8x8xf32> to vector<64x8xf32>
    %c3_107 = arith.constant 3 : index
    %c0_108 = arith.constant 0 : index
    %c0_109 = arith.constant 0 : index
    %95 = vector.load %arg4[%c3_107, %c0_108, %c0_109] : memref<9x8x8xf32, #tpu.memory_space<vmem>>, vector<1x8x8xf32>
    %96 = vector.shape_cast %95 : vector<1x8x8xf32> to vector<8x8xf32>
    %cst_110 = arith.constant dense<0.000000e+00> : vector<64x8xf32>
    %97 = tpu.matmul %94, %96, %cst_110 {dimension_numbers = #tpu.dot_dimension_numbers<[1], [0], [0], [1], [0, 0, 1, 1], [], []>} : vector<64x8xf32>, vector<8x8xf32>, vector<64x8xf32> -> vector<64x8xf32>
    %98 = arith.addf %92, %97 : vector<64x8xf32>
    %c1_111 = arith.constant 1 : index
    %c1_112 = arith.constant 1 : index
    %c0_113 = arith.constant 0 : index
    %99 = vector.load %arg7[%c1_111, %c1_112, %c0_113] : memref<10x10x8xf32, #tpu.memory_space<vmem>>, vector<8x8x8xf32>
    %100 = vector.shape_cast %99 : vector<8x8x8xf32> to vector<64x8xf32>
    %c4_114 = arith.constant 4 : index
    %c0_115 = arith.constant 0 : index
    %c0_116 = arith.constant 0 : index
    %101 = vector.load %arg4[%c4_114, %c0_115, %c0_116] : memref<9x8x8xf32, #tpu.memory_space<vmem>>, vector<1x8x8xf32>
    %102 = vector.shape_cast %101 : vector<1x8x8xf32> to vector<8x8xf32>
    %cst_117 = arith.constant dense<0.000000e+00> : vector<64x8xf32>
    %103 = tpu.matmul %100, %102, %cst_117 {dimension_numbers = #tpu.dot_dimension_numbers<[1], [0], [0], [1], [0, 0, 1, 1], [], []>} : vector<64x8xf32>, vector<8x8xf32>, vector<64x8xf32> -> vector<64x8xf32>
    %104 = arith.addf %98, %103 : vector<64x8xf32>
    %c1_118 = arith.constant 1 : index
    %c2_119 = arith.constant 2 : index
    %c0_120 = arith.constant 0 : index
    %105 = vector.load %arg7[%c1_118, %c2_119, %c0_120] : memref<10x10x8xf32, #tpu.memory_space<vmem>>, vector<8x8x8xf32>
    %106 = vector.shape_cast %105 : vector<8x8x8xf32> to vector<64x8xf32>
    %c5_121 = arith.constant 5 : index
    %c0_122 = arith.constant 0 : index
    %c0_123 = arith.constant 0 : index
    %107 = vector.load %arg4[%c5_121, %c0_122, %c0_123] : memref<9x8x8xf32, #tpu.memory_space<vmem>>, vector<1x8x8xf32>
    %108 = vector.shape_cast %107 : vector<1x8x8xf32> to vector<8x8xf32>
    %cst_124 = arith.constant dense<0.000000e+00> : vector<64x8xf32>
    %109 = tpu.matmul %106, %108, %cst_124 {dimension_numbers = #tpu.dot_dimension_numbers<[1], [0], [0], [1], [0, 0, 1, 1], [], []>} : vector<64x8xf32>, vector<8x8xf32>, vector<64x8xf32> -> vector<64x8xf32>
    %110 = arith.addf %104, %109 : vector<64x8xf32>
    %c2_125 = arith.constant 2 : index
    %c0_126 = arith.constant 0 : index
    %c0_127 = arith.constant 0 : index
    %111 = vector.load %arg7[%c2_125, %c0_126, %c0_127] : memref<10x10x8xf32, #tpu.memory_space<vmem>>, vector<8x8x8xf32>
    %112 = vector.shape_cast %111 : vector<8x8x8xf32> to vector<64x8xf32>
    %c6_128 = arith.constant 6 : index
    %c0_129 = arith.constant 0 : index
    %c0_130 = arith.constant 0 : index
    %113 = vector.load %arg4[%c6_128, %c0_129, %c0_130] : memref<9x8x8xf32, #tpu.memory_space<vmem>>, vector<1x8x8xf32>
    %114 = vector.shape_cast %113 : vector<1x8x8xf32> to vector<8x8xf32>
    %cst_131 = arith.constant dense<0.000000e+00> : vector<64x8xf32>
    %115 = tpu.matmul %112, %114, %cst_131 {dimension_numbers = #tpu.dot_dimension_numbers<[1], [0], [0], [1], [0, 0, 1, 1], [], []>} : vector<64x8xf32>, vector<8x8xf32>, vector<64x8xf32> -> vector<64x8xf32>
    %116 = arith.addf %110, %115 : vector<64x8xf32>
    %c2_132 = arith.constant 2 : index
    %c1_133 = arith.constant 1 : index
    %c0_134 = arith.constant 0 : index
    %117 = vector.load %arg7[%c2_132, %c1_133, %c0_134] : memref<10x10x8xf32, #tpu.memory_space<vmem>>, vector<8x8x8xf32>
    %118 = vector.shape_cast %117 : vector<8x8x8xf32> to vector<64x8xf32>
    %c7_135 = arith.constant 7 : index
    %c0_136 = arith.constant 0 : index
    %c0_137 = arith.constant 0 : index
    %119 = vector.load %arg4[%c7_135, %c0_136, %c0_137] : memref<9x8x8xf32, #tpu.memory_space<vmem>>, vector<1x8x8xf32>
    %120 = vector.shape_cast %119 : vector<1x8x8xf32> to vector<8x8xf32>
    %cst_138 = arith.constant dense<0.000000e+00> : vector<64x8xf32>
    %121 = tpu.matmul %118, %120, %cst_138 {dimension_numbers = #tpu.dot_dimension_numbers<[1], [0], [0], [1], [0, 0, 1, 1], [], []>} : vector<64x8xf32>, vector<8x8xf32>, vector<64x8xf32> -> vector<64x8xf32>
    %122 = arith.addf %116, %121 : vector<64x8xf32>
    %c2_139 = arith.constant 2 : index
    %c2_140 = arith.constant 2 : index
    %c0_141 = arith.constant 0 : index
    %123 = vector.load %arg7[%c2_139, %c2_140, %c0_141] : memref<10x10x8xf32, #tpu.memory_space<vmem>>, vector<8x8x8xf32>
    %124 = vector.shape_cast %123 : vector<8x8x8xf32> to vector<64x8xf32>
    %c8_142 = arith.constant 8 : index
    %c0_143 = arith.constant 0 : index
    %c0_144 = arith.constant 0 : index
    %125 = vector.load %arg4[%c8_142, %c0_143, %c0_144] : memref<9x8x8xf32, #tpu.memory_space<vmem>>, vector<1x8x8xf32>
    %126 = vector.shape_cast %125 : vector<1x8x8xf32> to vector<8x8xf32>
    %cst_145 = arith.constant dense<0.000000e+00> : vector<64x8xf32>
    %127 = tpu.matmul %124, %126, %cst_145 {dimension_numbers = #tpu.dot_dimension_numbers<[1], [0], [0], [1], [0, 0, 1, 1], [], []>} : vector<64x8xf32>, vector<8x8xf32>, vector<64x8xf32> -> vector<64x8xf32>
    %128 = arith.addf %122, %127 : vector<64x8xf32>
    %c0_146 = arith.constant 0 : index
    %c0_147 = arith.constant 0 : index
    %129 = vector.load %arg5[%c0_146, %c0_147] : memref<1x8xf32, #tpu.memory_space<vmem>>, vector<1x8xf32>
    %130 = vector.broadcast %129 : vector<1x8xf32> to vector<64x8xf32>
    %131 = arith.addf %128, %130 : vector<64x8xf32>
    %cst_148 = arith.constant 2.000000e-01 : f32
    %132 = vector.broadcast %cst_148 : f32 to vector<64x8xf32>
    %133 = arith.mulf %132, %131 : vector<64x8xf32>
    %134 = arith.maximumf %131, %133 : vector<64x8xf32>
    %135 = vector.shape_cast %134 : vector<64x8xf32> to vector<1x8x8x8xf32>
    %c0_149 = arith.constant 0 : index
    %c0_150 = arith.constant 0 : index
    %c0_151 = arith.constant 0 : index
    %c0_152 = arith.constant 0 : index
    %136 = vector.load %arg6[%c0_149, %c0_150, %c0_151, %c0_152] : memref<1x8x8x8xf32, #tpu.memory_space<vmem>>, vector<1x8x8x8xf32>
    tpu.vector_store %arg6[%c0_149, %c0_150, %c0_151, %c0_152], %135 {strides = array<i32>} : memref<1x8x8x8xf32, #tpu.memory_space<vmem>>, vector<1x8x8x8xf32>,
    return
  }
  func.func @transform_0(%arg0: i32) -> (i32, i32, i32, i32, i32) {
    %c0_i32 = arith.constant 0 : i32
    %c0_i32_0 = arith.constant 0 : i32
    %c0_i32_1 = arith.constant 0 : i32
    %c0_i32_2 = arith.constant 0 : i32
    %c0_i32_3 = arith.constant 0 : i32
    return %arg0, %c0_i32, %c0_i32_0, %c0_i32_1, %c0_i32_2 : i32, i32, i32, i32, i32
  }
  func.func @transform_1(%arg0: i32) -> (i32, i32, i32) {
    %c0_i32 = arith.constant 0 : i32
    %c0_i32_0 = arith.constant 0 : i32
    %c0_i32_1 = arith.constant 0 : i32
    %c0_i32_2 = arith.constant 0 : i32
    return %c0_i32, %c0_i32_0, %c0_i32_1 : i32, i32, i32
  }
  func.func @transform_2(%arg0: i32) -> (i32, i32) {
    %c0_i32 = arith.constant 0 : i32
    %c0_i32_0 = arith.constant 0 : i32
    %c0_i32_1 = arith.constant 0 : i32
    return %c0_i32, %c0_i32_0 : i32, i32
  }
  func.func @transform_3(%arg0: i32) -> (i32, i32, i32) {
    %c0_i32 = arith.constant 0 : i32
    %c0_i32_0 = arith.constant 0 : i32
    %c0_i32_1 = arith.constant 0 : i32
    %c0_i32_2 = arith.constant 0 : i32
    return %c0_i32, %c0_i32_0, %c0_i32_1 : i32, i32, i32
  }
  func.func @transform_4(%arg0: i32) -> (i32, i32) {
    %c0_i32 = arith.constant 0 : i32
    %c0_i32_0 = arith.constant 0 : i32
    %c0_i32_1 = arith.constant 0 : i32
    return %c0_i32, %c0_i32_0 : i32, i32
  }
  func.func @transform_5(%arg0: i32) -> (i32, i32, i32, i32) {
    %c0_i32 = arith.constant 0 : i32
    %c0_i32_0 = arith.constant 0 : i32
    %c0_i32_1 = arith.constant 0 : i32
    %c0_i32_2 = arith.constant 0 : i32
    return %arg0, %c0_i32, %c0_i32_0, %c0_i32_1 : i32, i32, i32, i32
  }
}

</mosaic_0001>

<bundles_post_ra>
// kernel: tpu_custom_call.1
= control target key start
LH: loop header
LB: loop body
LE: loop exit
PB: predicated region body
PF: predicated region fallthrough
CT: control target
= control target key end

     0   :  { %10 = vsyncpa [#allocation4], 0  ;;  %s4464_s0 = inlined_call_operand.vmem [shape: f32[2,4,9,9,4], index: 0, kind: input, shape index: {}]   ;;  %s4465_s1 = inlined_call_operand.vmem [shape: f32[9,4,8], index: 1, kind: input, shape index: {}]   ;;  %s4466_s2 = inlined_call_operand.vmem [shape: f32[1,8], index: 2, kind: input, shape index: {}]   ;;  %s4467_s3 = inlined_call_operand.vmem [shape: f32[9,8,8], index: 3, kind: input, shape index: {}]   ;;  %s4468_s4 = inlined_call_operand.vmem [shape: f32[1,8], index: 4, kind: input, shape index: {}]   ;;  %s4469_s5 = inlined_call_operand.hbm [shape: f32[2,8,8,8], index: 5, kind: output, shape index: {}]  }
   0x1   :  { %12 = vsyncpa [#allocation4 + $0x1], 0  ;;  %s3839_s18 = smov 0   ;;  %s3841_s19 = smov 0  }
   0x2   :  { %s3843_s20 = smov 0   ;;  %s3845_s21 = smov 0  }
   0x3 LB: > { %s3860_s22 = sadd.s32 4294967295, %s3803_s21   ;;  %s3047_s23 = sadd.s32 4294967294, %s3803_s21   ;;  %s3803_s21 = sphi %s3845_s21, %s4493_s21   ;;  %s3799_s20 = sphi %s3843_s20, %s4492_s20   ;;  %s3795_s19 = sphi %s3841_s19, %s4491_s19   ;;  %s3791_s18 = sphi %s3839_s18, %s4490_s18  }
   0x4   : > { %s3864_s24 = sadd.s32 1, %s3803_s21   ;;  %s135_s25 = sadd.s32 1, %s3799_s20 }
   0x5   : > { %s132_s26 = ssub.s32 %s3803_s21, %s3864_s24  ;;  %p145_p0 = scmp.ne.s32.totalorder %s3799_s20, %s3795_s19 }
   0x6   : > { %p133_p1 = scmp.eq.s32.totalorder %s132_s26, 0  ;;  %p146_p2 = scmp.eq.s32.totalorder %s3860_s22, 1 }
   0x7   : > { %p151_p3 = scmp.ne.s32.totalorder %s3795_s19, %s3791_s18  ;;  %p152_p4 = scmp.eq.s32.totalorder %s3047_s23, 1 }
   0x8   : > { %s3875_s27 = scalar_select %p133_p1, %s3799_s20, %s135_s25  }
   0x9   : > { %p3877_p5 = por %p146_p2, %p145_p0  ;;  %p3881_p6 = por %p152_p4, %p151_p3 }
   0xa   : > { %p3050_p7 = scmp.ge.s32.totalorder %s3803_s21, 1  ;;  %p190_p8 = scmp.lt.s32.totalorder %s3803_s21, 3 }
   0xc   : > { %p191_p9 = pnand %p3050_p7, %p190_p8 }
   0xe   : > { %194 = sbr.rel (%p191_p9) target bundleno = 596 (0x254), region = 40 }
  0x13   : > { %v3061_v0 = vld [vmem:[%s4465_s1 + $0x4] sm:$0xf]  ;;  %vm268_vm0 = vcmask 1043456   ;;  %v231_v1 = vld [vmem:[%s4465_s1] sm:$0xf]  ;;  %p218_p10 = scmp.lt.s32.totalorder %s3860_s22, 1 }
  0x14   : > { %3448 = vmatprep.subr.msk.mxu0 %vm268_vm0, %v3061_v0  ;;  %3462 = vmatprep.subr.msk.mxu1 %vm268_vm0, %v231_v1  ;;  %v3080_v2 = vld [vmem:[%s4465_s1 + $0x8] sm:$0xf]  ;;  %v3098_v3 = vld [vmem:[%s4465_s1 + $0xc] sm:$0xf]  ;;  %vm243_vm1 = vcmask 31744   ;;  %vm1594_vm2 = vcmask 64512  }
  0x15   : > { %3449 = vmatpush3.msk.msra.mxu0 %vm268_vm0, %v3061_v0  ;;  %s219_s13 = scalar_select %p218_p10, %s3860_s22, 1  ;;  %3463 = vmatpush3.msk.msra.mxu1 %vm268_vm0, %v231_v1  ;;  %v3116_v10 = vld [vmem:[%s4465_s1 + $0x10] sm:$0xf]  ;;  %v3134_v11 = vld [vmem:[%s4465_s1 + $0x14] sm:$0xf]  ;;  %vm1596_vm3 = vcmask 58368  }
  0x16   : > { %3476 = vmatprep.subr.msk.mxu0 %vm268_vm0, %v3080_v2  ;;  %3490 = vmatprep.subr.msk.mxu1 %vm268_vm0, %v3098_v3  ;;  %v3152_v28 = vld [vmem:[%s4465_s1 + $0x18] sm:$0xf]  ;;  %v3170_v29 = vld [vmem:[%s4465_s1 + $0x1c] sm:$0xf]  ;;  %v3188_v46 = vld [vmem:[%s4465_s1 + $0x20] sm:$0xf] }
  0x17   : > { %s3700_s14 = smul.u32 576, %s219_s13  ;;  %v3805_v60 = vmov 0.0   ;;  %v3199_v61 = vld [vmem:[%s4467_s3 + $0x8] sm:$0xff]  ;;  %v1633_v62 = vld [vmem:[%s4467_s3] sm:$0xff]  ;;  %v4177_v1 = vld [vmem:[%s4467_s3 + $0x10] sm:$0xff]  ;;  %s215_s16 = sand.u32 1, %s3795_s19  }
  0x18   : > { %1600 = vst.msk [vmem:[#allocation2 + $0x20] sm:$0xff] %vm1594_vm2, %v3805_v60  ;;  %1595 = vst.msk [vmem:[#allocation2] sm:$0xff] %vm1594_vm2, %v3805_v60  ;;  %s3051_s25 = sshll.u32 %s215_s16, 6  ;;  %s3285_s30 = sshll.u32 %s3860_s22, 10 }
  0x19   : > { %s3910_s17 = scalar_lea.vmem %s4464_s0, %s3700_s14  ;;  %1601 = vst.msk [vmem:[#allocation2 + $0x28] sm:$0x3] %vm1596_vm3, %v3805_v60  ;;  %1597 = vst.msk [vmem:[#allocation2 + $0x8] sm:$0x3] %vm1596_vm3, %v3805_v60  ;;  %s4395_s26 = scalar_lea.vmem [#allocation3], %s3051_s25 }
  0x1a   : > { %v3053_v4 = vld [vmem:[%s3910_s17 + $0x90] sm:$0xff]  ;;  %v223_v5 = vld [vmem:[%s3910_s17] sm:$0xff]  ;;  %1598 = vst.msk [vmem:[#allocation2 + $0x10] sm:$0xff] %vm1594_vm2, %v3805_v60  ;;  %1602 = vst.msk [vmem:[#allocation2 + $0x30] sm:$0xff] %vm1594_vm2, %v3805_v60  ;;  %s2985_s6 = sshll.u32 %s4395_s26, 4  ;;  %s4414_s9 = scalar_lea.hbm %s4469_s5, %s3285_s30  ;;  %s4416_s6 = int_to_ptr.vmem [resolvable:$true] %s2985_s6 }
  0x1b   : > { %v3915_v6 = vld [vmem:[%s3910_s17 + $0xa0] sm:$0xff]  ;;  %3450 = vmatprep.mubr.msk.f32.mxu0 %vm243_vm1, %v3053_v4  ;;  %3464 = vmatprep.mubr.msk.f32.mxu1 %vm243_vm1, %v223_v5  ;;  %v3920_v7 = vld [vmem:[%s3910_s17 + $0x10] sm:$0xff]  ;;  %1599 = vst.msk [vmem:[#allocation2 + $0x18] sm:$0x3] %vm1596_vm3, %v3805_v60  ;;  %1603 = vst.msk [vmem:[#allocation2 + $0x38] sm:$0x3] %vm1596_vm3, %v3805_v60 }
  0x1c   : > { %v3923_v8 = vld [vmem:[%s3910_s17 + $0xb0] sm:$0xff]  ;;  %v3926_v9 = vld [vmem:[%s3910_s17 + $0x20] sm:$0xff]  ;;  %3451 = vmatmul.mubr.msk.f32.vlgmr.msra.gmra.mxu0 %vm243_vm1, %v3915_v6  ;;  %3465 = vmatmul.mubr.msk.f32.vlgmr.msra.gmra.mxu1 %vm243_vm1, %v3920_v7  ;;  %1604 = vst.msk [vmem:[#allocation2 + $0x40] sm:$0xff] %vm1594_vm2, %v3805_v60  ;;  %1606 = vst.msk [vmem:[#allocation2 + $0x50] sm:$0xff] %vm1594_vm2, %v3805_v60  ;;  %s4424_s22 = scalar_lea.sflag [#allocation4], %s215_s16  ;;  %s3743_s10 = scalar_lea.vmem %s4416_s6, 1024 }
  0x1d   : > { %3477 = vmatpush3.msk.msra.mxu0 %vm268_vm0, %v3080_v2  ;;  %3453 = vmatprep.mubr.msk.f32.mxu0 %vm243_vm1, %v3923_v8  ;;  %v3942_v12 = vld [vmem:[%s3910_s17 + $0xc0] sm:$0xff]  ;;  %v3945_v13 = vld [vmem:[%s3910_s17 + $0x30] sm:$0xff]  ;;  %1605 = vst.msk [vmem:[#allocation2 + $0x48] sm:$0x3] %vm1596_vm3, %v3805_v60  ;;  %1607 = vst.msk [vmem:[#allocation2 + $0x58] sm:$0x3] %vm1596_vm3, %v3805_v60  ;;  %p3744_p11 = scmp.ne.s32.totalorder %s4416_s6, %s3743_s10 }
  0x1e   : > { %3467 = vmatprep.mubr.msk.f32.mxu1 %vm243_vm1, %v3926_v9  ;;  %v3950_v14 = vld [vmem:[%s3910_s17 + $0xd0] sm:$0xff]  ;;  %v3953_v15 = vld [vmem:[%s3910_s17 + $0x40] sm:$0xff]  ;;  %3491 = vmatpush3.msk.msra.mxu1 %vm268_vm0, %v3098_v3  ;;  %1608 = vst.msk [vmem:[#allocation2 + $0x60] sm:$0xff] %vm1594_vm2, %v3805_v60  ;;  %1610 = vst.msk [vmem:[#allocation2 + $0x70] sm:$0xff] %vm1594_vm2, %v3805_v60  ;;  %s3806_s11 = smov [#allocation3]  }
  0x1f   : > { %3504 = vmatprep.subr.msk.mxu0 %vm268_vm0, %v3116_v10  ;;  %3518 = vmatprep.subr.msk.mxu1 %vm268_vm0, %v3134_v11  ;;  %v3967_v16 = vld [vmem:[%s3910_s17 + $0xe0] sm:$0xff]  ;;  %v3970_v17 = vld [vmem:[%s3910_s17 + $0x50] sm:$0xff]  ;;  %1609 = vst.msk [vmem:[#allocation2 + $0x68] sm:$0x3] %vm1596_vm3, %v3805_v60  ;;  %1611 = vst.msk [vmem:[#allocation2 + $0x78] sm:$0x3] %vm1596_vm3, %v3805_v60  ;;  %p3745_p12 = pnand %p3744_p11, %p3877_p5 }
  0x20   : > { %3454 = vmatmul.mubr.msk.f32.gmra.mxu0 %vm243_vm1, %v3942_v12  ;;  %3468 = vmatmul.mubr.msk.f32.gmra.mxu1 %vm243_vm1, %v3945_v13  ;;  %v3973_v18 = vld [vmem:[%s3910_s17 + $0xf0] sm:$0xff]  ;;  %v3976_v19 = vld [vmem:[%s3910_s17 + $0x60] sm:$0xff]  ;;  %1612 = vst.msk [vmem:[#allocation2 + $0x80] sm:$0xff] %vm1594_vm2, %v3805_v60  ;;  %1614 = vst.msk [vmem:[#allocation2 + $0x90] sm:$0xff] %vm1594_vm2, %v3805_v60  ;;  %s3747_s12 = sshll.u32 %s3806_s11, 4  ;;  %s3748_s12 = int_to_ptr.vmem [resolvable:$false] %s3747_s12 }
  0x21   : > { %3456 = vmatprep.mubr.msk.f32.mxu0 %vm243_vm1, %v3950_v14  ;;  %3470 = vmatprep.mubr.msk.f32.mxu1 %vm243_vm1, %v3953_v15  ;;  %v3987_v20 = vld [vmem:[%s3910_s17 + $0x100] sm:$0xff]  ;;  %v3990_v21 = vld [vmem:[%s3910_s17 + $0x70] sm:$0xff]  ;;  %1613 = vst.msk [vmem:[#allocation2 + $0x88] sm:$0x3] %vm1596_vm3, %v3805_v60  ;;  %1615 = vst.msk [vmem:[#allocation2 + $0x98] sm:$0x3] %vm1596_vm3, %v3805_v60  ;;  %p3746_p13 = pneg %p3745_p12  ;;  %p3750_p0 = scmp.lt.s32.totalorder %s4416_s6, %s3748_s12 }
  0x22   : > { %v509_v22 = vld [vmem:[%s3910_s17 + $0x1] sm:$0xff]  ;;  %v4000_v24 = vld [vmem:[%s3910_s17 + $0x11] sm:$0xff]  ;;  %4474 = vst [vmem:[#allocation6_spill] sm:$0xff] %v4177_v1  ;;  %s3749_s13 = scalar_lea.vmem %s3748_s12, 2048 }
  0x23   : > { %v3090_v23 = vld [vmem:[%s3910_s17 + $0x120] sm:$0xff]  ;;  %v3091_v25 = vld [vmem:[%s3910_s17 + $0x130] sm:$0xff]  ;;  %v4183_v2 = vld [vmem:[%s4467_s3 + $0x18] sm:$0xff]  ;;  %p3751_p1 = scmp.lt.s32.totalorder %s3749_s13, %s3743_s10 }
  0x24   : > { %3457 = vmatmul.mubr.msk.f32.gmra.mxu0 %vm243_vm1, %v3967_v16  ;;  %3471 = vmatmul.mubr.msk.f32.gmra.mxu1 %vm243_vm1, %v3970_v17  ;;  %v4005_v26 = vld [vmem:[%s3910_s17 + $0x21] sm:$0xff]  ;;  %v4021_v30 = vld [vmem:[%s3910_s17 + $0x31] sm:$0xff]  ;;  %4475 = vst [vmem:[#allocation7_spill] sm:$0xff] %v4183_v2 }
  0x25   : > { %3459 = vmatprep.mubr.msk.f32.mxu0 %vm243_vm1, %v3973_v18  ;;  %3473 = vmatprep.mubr.msk.f32.mxu1 %vm243_vm1, %v3976_v19  ;;  %v3092_v27 = vld [vmem:[%s3910_s17 + $0x140] sm:$0xff]  ;;  %v3093_v31 = vld [vmem:[%s3910_s17 + $0x150] sm:$0xff]  ;;  %p3752_p2 = por %p3751_p1, %p3750_p0 }
  0x26   : > { %v4026_v32 = vld [vmem:[%s3910_s17 + $0x41] sm:$0xff]  ;;  %v4038_v34 = vld [vmem:[%s3910_s17 + $0x51] sm:$0xff] }
  0x27   : > { %v3094_v33 = vld [vmem:[%s3910_s17 + $0x160] sm:$0xff]  ;;  %v3095_v35 = vld [vmem:[%s3910_s17 + $0x170] sm:$0xff]  ;;  %p3753_p3 = pnand %p3752_p2, %p3746_p13 }
  0x28   : > { %3460 = vmatmul.mubr.msk.f32.gmra.mxu0 %vm243_vm1, %v3987_v20  ;;  %3474 = vmatmul.mubr.msk.f32.gmra.mxu1 %vm243_vm1, %v3990_v21  ;;  %v4043_v36 = vld [vmem:[%s3910_s17 + $0x61] sm:$0xff]  ;;  %v4052_v38 = vld [vmem:[%s3910_s17 + $0x71] sm:$0xff] }
  0x29   : > { %3478 = vmatprep.mubr.msk.f32.mxu0 %vm243_vm1, %v509_v22  ;;  %3492 = vmatprep.mubr.msk.f32.mxu1 %vm243_vm1, %v3090_v23  ;;  %v3096_v37 = vld [vmem:[%s3910_s17 + $0x180] sm:$0xff]  ;;  %v3097_v39 = vld [vmem:[%s3910_s17 + $0x190] sm:$0xff] }
  0x2a   : > { %v3108_v40 = vld [vmem:[%s3910_s17 + $0x1b0] sm:$0xff]  ;;  %v3126_v41 = vld [vmem:[%s3910_s17 + $0x121] sm:$0xff] }
  0x2b   : > { %v3109_v42 = vld [vmem:[%s3910_s17 + $0x1c0] sm:$0xff]  ;;  %v3127_v43 = vld [vmem:[%s3910_s17 + $0x131] sm:$0xff] }
  0x2c   : > { %3479 = vmatmul.mubr.msk.f32.vlgmr.msra.gmra.mxu0 %vm243_vm1, %v4000_v24  ;;  %3493 = vmatmul.mubr.msk.f32.vlgmr.msra.gmra.mxu1 %vm243_vm1, %v3091_v25  ;;  %v3110_v44 = vld [vmem:[%s3910_s17 + $0x1d0] sm:$0xff]  ;;  %v3128_v45 = vld [vmem:[%s3910_s17 + $0x141] sm:$0xff] }
  0x2d   : > { %3505 = vmatpush3.msk.msra.mxu0 %vm268_vm0, %v3116_v10  ;;  %3481 = vmatprep.mubr.msk.f32.mxu0 %vm243_vm1, %v4005_v26  ;;  %v3111_v47 = vld [vmem:[%s3910_s17 + $0x1e0] sm:$0xff]  ;;  %v3129_v48 = vld [vmem:[%s3910_s17 + $0x151] sm:$0xff] }
  0x2e   : > { %3495 = vmatprep.mubr.msk.f32.mxu1 %vm243_vm1, %v3092_v27  ;;  %3519 = vmatpush3.msk.msra.mxu1 %vm268_vm0, %v3134_v11  ;;  %v3112_v49 = vld [vmem:[%s3910_s17 + $0x1f0] sm:$0xff]  ;;  %v3130_v50 = vld [vmem:[%s3910_s17 + $0x161] sm:$0xff] }
  0x2f   : > { %3532 = vmatprep.subr.msk.mxu0 %vm268_vm0, %v3152_v28  ;;  %3546 = vmatprep.subr.msk.mxu1 %vm268_vm0, %v3170_v29  ;;  %v3113_v51 = vld [vmem:[%s3910_s17 + $0x200] sm:$0xff]  ;;  %v3131_v52 = vld [vmem:[%s3910_s17 + $0x171] sm:$0xff] }
  0x30   : > { %3482 = vmatmul.mubr.msk.f32.gmra.mxu0 %vm243_vm1, %v4021_v30  ;;  %3496 = vmatmul.mubr.msk.f32.gmra.mxu1 %vm243_vm1, %v3093_v31  ;;  %v3114_v53 = vld [vmem:[%s3910_s17 + $0x210] sm:$0xff]  ;;  %v3132_v54 = vld [vmem:[%s3910_s17 + $0x181] sm:$0xff] }
  0x31   : > { %3484 = vmatprep.mubr.msk.f32.mxu0 %vm243_vm1, %v4026_v32  ;;  %3498 = vmatprep.mubr.msk.f32.mxu1 %vm243_vm1, %v3094_v33  ;;  %v3115_v55 = vld [vmem:[%s3910_s17 + $0x220] sm:$0xff]  ;;  %v3133_v56 = vld [vmem:[%s3910_s17 + $0x191] sm:$0xff] }
  0x32   : > { %v3151_v57 = vld [vmem:[%s3910_s17 + $0x80] sm:$0xff]  ;;  %v3169_v58 = vld [vmem:[%s3910_s17 + $0x110] sm:$0xff] }
  0x33   : > { %v3187_v59 = vld [vmem:[%s3910_s17 + $0x81] sm:$0xff] }
  0x34   : > { %3485 = vmatmul.mubr.msk.f32.gmra.mxu0 %vm243_vm1, %v4038_v34  ;;  %3499 = vmatmul.mubr.msk.f32.gmra.mxu1 %vm243_vm1, %v3095_v35  ;;  %v1634_v63 = vld [vmem:[#allocation2 + $0x1] sm:$0xff] }
  0x35   : > { %3487 = vmatprep.mubr.msk.f32.mxu0 %vm243_vm1, %v4043_v36  ;;  %3501 = vmatprep.mubr.msk.f32.mxu1 %vm243_vm1, %v3096_v37  ;;  %v1625_v0 = vld [vmem:[#allocation2] sm:$0xff] }
  0x38   : > { %3488 = vmatmul.mubr.msk.f32.gmra.mxu0 %vm243_vm1, %v4052_v38  ;;  %3502 = vmatmul.mubr.msk.f32.gmra.mxu1 %vm243_vm1, %v3097_v39 }
  0x39   : > { %3506 = vmatprep.mubr.msk.f32.mxu0 %vm243_vm1, %v3108_v40  ;;  %3520 = vmatprep.mubr.msk.f32.mxu1 %vm243_vm1, %v3126_v41 }
  0x3c   : > { %3507 = vmatmul.mubr.msk.f32.vlgmr.msra.gmra.mxu0 %vm243_vm1, %v3109_v42  ;;  %3521 = vmatmul.mubr.msk.f32.vlgmr.msra.gmra.mxu1 %vm243_vm1, %v3127_v43 }
  0x3d   : > { %3533 = vmatpush3.msk.msra.mxu0 %vm268_vm0, %v3152_v28  ;;  %3509 = vmatprep.mubr.msk.f32.mxu0 %vm243_vm1, %v3110_v44 }
  0x3e   : > { %3523 = vmatprep.mubr.msk.f32.mxu1 %vm243_vm1, %v3128_v45  ;;  %3547 = vmatpush3.msk.msra.mxu1 %vm268_vm0, %v3170_v29 }
  0x3f   : > { %3560 = vmatprep.subr.msk.mxu0 %vm268_vm0, %v3188_v46  ;;  %3574 = vmatprep.subr.mxu1 %v3199_v61 }
  0x40   : > { %3510 = vmatmul.mubr.msk.f32.gmra.mxu0 %vm243_vm1, %v3111_v47  ;;  %3524 = vmatmul.mubr.msk.f32.gmra.mxu1 %vm243_vm1, %v3129_v48 }
  0x41   : > { %3512 = vmatprep.mubr.msk.f32.mxu0 %vm243_vm1, %v3112_v49  ;;  %3526 = vmatprep.mubr.msk.f32.mxu1 %vm243_vm1, %v3130_v50 }
  0x44   : > { %3513 = vmatmul.mubr.msk.f32.gmra.mxu0 %vm243_vm1, %v3113_v51  ;;  %3527 = vmatmul.mubr.msk.f32.gmra.mxu1 %vm243_vm1, %v3131_v52 }
  0x45   : > { %3515 = vmatprep.mubr.msk.f32.mxu0 %vm243_vm1, %v3114_v53  ;;  %3529 = vmatprep.mubr.msk.f32.mxu1 %vm243_vm1, %v3132_v54 }
  0x48   : > { %3516 = vmatmul.mubr.msk.f32.gmra.mxu0 %vm243_vm1, %v3115_v55  ;;  %3530 = vmatmul.mubr.msk.f32.gmra.mxu1 %vm243_vm1, %v3133_v56 }
  0x49   : > { %3534 = vmatprep.mubr.msk.f32.mxu0 %vm243_vm1, %v3920_v7  ;;  %3548 = vmatprep.mubr.msk.f32.mxu1 %vm243_vm1, %v3915_v6 }
  0x4c   : > { %3535 = vmatmul.mubr.msk.f32.vlgmr.msra.gmra.mxu0 %vm243_vm1, %v3926_v9  ;;  %3549 = vmatmul.mubr.msk.f32.vlgmr.msra.gmra.mxu1 %vm243_vm1, %v3923_v8 }
  0x4d   : > { %3561 = vmatpush3.msk.msra.mxu0 %vm268_vm0, %v3188_v46  ;;  %3537 = vmatprep.mubr.msk.f32.mxu0 %vm243_vm1, %v3945_v13 }
  0x4e   : > { %3551 = vmatprep.mubr.msk.f32.mxu1 %vm243_vm1, %v3942_v12  ;;  %3575 = vmatpush3.msra.mxu1 %v3199_v61 }
  0x4f   : > { %3588 = vmatprep.subr.mxu0 %v1633_v62  ;;  %3602 = vmatprep.subr.mxu1 %v4177_v1 }
  0x50   : > { %3538 = vmatmul.mubr.msk.f32.gmra.mxu0 %vm243_vm1, %v3953_v15  ;;  %3552 = vmatmul.mubr.msk.f32.gmra.mxu1 %vm243_vm1, %v3950_v14 }
  0x51   : > { %3540 = vmatprep.mubr.msk.f32.mxu0 %vm243_vm1, %v3970_v17  ;;  %3554 = vmatprep.mubr.msk.f32.mxu1 %vm243_vm1, %v3967_v16 }
  0x54   : > { %3541 = vmatmul.mubr.msk.f32.gmra.mxu0 %vm243_vm1, %v3976_v19  ;;  %3555 = vmatmul.mubr.msk.f32.gmra.mxu1 %vm243_vm1, %v3973_v18 }
  0x55   : > { %3543 = vmatprep.mubr.msk.f32.mxu0 %vm243_vm1, %v3990_v21  ;;  %3557 = vmatprep.mubr.msk.f32.mxu1 %vm243_vm1, %v3987_v20 }
  0x58   : > { %3544 = vmatmul.mubr.msk.f32.gmra.mxu0 %vm243_vm1, %v3151_v57  ;;  %3558 = vmatmul.mubr.msk.f32.gmra.mxu1 %vm243_vm1, %v3169_v58 }
  0x59   : > { %3562 = vmatprep.mubr.msk.f32.mxu0 %vm243_vm1, %v4000_v24  ;;  %3576 = vmatprep.mubr.msk.f32.mxu1 %vm1594_vm2, %v1634_v63 }
  0x5c   : > { %3563 = vmatmul.mubr.msk.f32.vlgmr.msra.gmra.mxu0 %vm243_vm1, %v4005_v26 }
  0x5d   : > { %3565 = vmatprep.mubr.msk.f32.mxu0 %vm243_vm1, %v4021_v30  ;;  %3589 = vmatpush3.msra.mxu0 %v1633_v62 }
  0x5e   : > { %3616 = vmatprep.subr.mxu0 %v4183_v2 }
  0x60   : > { %3566 = vmatmul.mubr.msk.f32.gmra.mxu0 %vm243_vm1, %v4026_v32 }
  0x61   : > { %3568 = vmatprep.mubr.msk.f32.mxu0 %vm243_vm1, %v4038_v34 }
  0x64   : > { %3569 = vmatmul.mubr.msk.f32.gmra.mxu0 %vm243_vm1, %v4043_v36 }
  0x65   : > { %3571 = vmatprep.mubr.msk.f32.mxu0 %vm243_vm1, %v4052_v38 }
  0x68   : > { %3572 = vmatmul.mubr.msk.f32.gmra.mxu0 %vm243_vm1, %v3187_v59 }
  0x69   : > { %3590 = vmatprep.mubr.msk.f32.mxu0 %vm1594_vm2, %v1625_v0 }
  0xdc   : > { %v3452_v3 = vpop.f32.mrf.mxu0  ;;  %v3466_v4 = vpop.f32.mrf.mxu1 }
  0xdd   : > { %v476_v49 = vadd.f32 %v3466_v4, %v3452_v3 }
  0xde   : > { %v338_v5 = vpop.f32.mrf.mxu0  ;;  %v470_v6 = vpop.f32.mrf.mxu1 }
  0xdf   : > { %v471_v52 = vadd.f32 %v470_v6, %v338_v5 }
  0xe0   : > { %v3455_v7 = vpop.f32.mrf.mxu0  ;;  %v3469_v8 = vpop.f32.mrf.mxu1 }
  0xe1   : > { %v486_v56 = vadd.f32 %v3469_v8, %v3455_v7 }
  0xe2   : > { %v348_v9 = vpop.f32.mrf.mxu0  ;;  %v480_v10 = vpop.f32.mrf.mxu1 }
  0xe3   : > { %v481_v60 = vadd.f32 %v480_v10, %v348_v9 }
  0xe4   : > { %v3458_v11 = vpop.f32.mrf.mxu0  ;;  %v3472_v12 = vpop.f32.mrf.mxu1 }
  0xe5   : > { %v496_v63 = vadd.f32 %v3472_v12, %v3458_v11 }
  0xe6   : > { %v358_v13 = vpop.f32.mrf.mxu0  ;;  %v490_v14 = vpop.f32.mrf.mxu1 }
  0xe7   : > { %v491_v4 = vadd.f32 %v490_v14, %v358_v13 }
  0xe8   : > { %v3461_v15 = vpop.f32.mrf.mxu0  ;;  %v3475_v16 = vpop.f32.mrf.mxu1 }
  0xea   : > { %v4186_v17 = vpop.f32.mrf.mxu0  ;;  %v4188_v18 = vpop.f32.mrf.mxu1 }
  0xeb   : > { %v501_v10 = vadd.f32 %v4188_v18, %v4186_v17 }
  0xec   : > { %v3480_v19 = vpop.f32.mrf.mxu0  ;;  %v3494_v20 = vpop.f32.mrf.mxu1 }
  0xed   : > { %v652_v53 = vadd.f32 %v3480_v19, %v476_v49  ;;  %v506_v19 = vadd.f32 %v3475_v16, %v3461_v15 }
  0xee   : > { %v612_v21 = vpop.f32.mrf.mxu0  ;;  %v763_v22 = vpop.f32.mrf.mxu1 }
  0xef   : > { %v651_v57 = vadd.f32 %v612_v21, %v471_v52  ;;  %v803_v61 = vadd.f32 %v3494_v20, %v652_v53 }
  0xf0   : > { %v3483_v23 = vpop.f32.mrf.mxu0  ;;  %v3497_v24 = vpop.f32.mrf.mxu1 }
  0xf1   : > { %v654_v62 = vadd.f32 %v3483_v23, %v486_v56  ;;  %v802_v2 = vadd.f32 %v763_v22, %v651_v57 }
  0xf2   : > { %v622_v25 = vpop.f32.mrf.mxu0  ;;  %v773_v26 = vpop.f32.mrf.mxu1 }
  0xf3   : > { %v653_v1 = vadd.f32 %v622_v25, %v481_v60  ;;  %v805_v5 = vadd.f32 %v3497_v24, %v654_v62 }
  0xf4   : > { %v3486_v27 = vpop.f32.mrf.mxu0  ;;  %v3500_v28 = vpop.f32.mrf.mxu1 }
  0xf5   : > { %v804_v8 = vadd.f32 %v773_v26, %v653_v1 }
  0xf6   : > { %v632_v29 = vpop.f32.mrf.mxu0  ;;  %v783_v30 = vpop.f32.mrf.mxu1 }
  0xf7   : > { %v655_v49 = vadd.f32 %v632_v29, %v491_v4 }
  0xf8   : > { %v3489_v31 = vpop.f32.mrf.mxu0  ;;  %v4190_v32 = vpop.f32.mrf.mxu1 }
  0xf9   : > { %v658_v12 = vadd.f32 %v3489_v31, %v506_v19  ;;  %v806_v14 = vadd.f32 %v783_v30, %v655_v49  ;;  %v3198_v30 = vld [vmem:[%s4466_s2] ss:$0 sm:$0xff] }
  0xfa   : > { %v642_v33 = vpop.f32.mrf.mxu0  ;;  %v4192_v34 = vpop.f32.mrf.mxu1 }
  0xfb   : > { %v657_v25 = vadd.f32 %v642_v33, %v501_v10  ;;  %v809_v1 = vadd.f32 %v4190_v32, %v658_v12 }
  0xfc   : > { %v3508_v35 = vpop.f32.mrf.mxu0  ;;  %v3522_v36 = vpop.f32.mrf.mxu1 }
  0xfd   : > { %v808_v18 = vadd.f32 %v4192_v34, %v657_v25 }
  0xfe   : > { %v914_v37 = vpop.f32.mrf.mxu0  ;;  %v1064_v38 = vpop.f32.mrf.mxu1 }
  0xff   : > { %v953_v6 = vadd.f32 %v914_v37, %v802_v2 }
 0x100   : > { %v3511_v39 = vpop.f32.mrf.mxu0  ;;  %v3525_v40 = vpop.f32.mrf.mxu1 }
 0x101   : > { %v956_v52 = vadd.f32 %v3511_v39, %v805_v5  ;;  %v1103_v22 = vadd.f32 %v1064_v38, %v953_v6 }
 0x102   : > { %v924_v41 = vpop.f32.mrf.mxu0  ;;  %v1074_v42 = vpop.f32.mrf.mxu1 }
 0x103   : > { %v955_v23 = vadd.f32 %v924_v41, %v804_v8  ;;  %v1106_v15 = vadd.f32 %v3525_v40, %v956_v52 }
 0x104   : > { %v3514_v43 = vpop.f32.mrf.mxu0  ;;  %v3528_v44 = vpop.f32.mrf.mxu1 }
 0x106   : > { %v934_v45 = vpop.f32.mrf.mxu0  ;;  %v4194_v46 = vpop.f32.mrf.mxu1 }
 0x107   : > { %4476 = vst [vmem:[#allocation8_spill] sm:$0xff] %v4194_v46  ;;  %v656_v46 = vadd.f32 %v3486_v27, %v496_v63  ;;  %v957_v26 = vadd.f32 %v934_v45, %v806_v14 }
 0x108   : > { %v3517_v47 = vpop.f32.mrf.mxu0  ;;  %v4196_v48 = vpop.f32.mrf.mxu1 }
 0x109   : > { %4477 = vst [vmem:[#allocation9_spill] sm:$0xff] %v4196_v48  ;;  %v954_v48 = vadd.f32 %v3508_v35, %v803_v61  ;;  %v807_v11 = vadd.f32 %v3500_v28, %v656_v46  ;;  %v1105_v35 = vadd.f32 %v1074_v42, %v955_v23  ;;  %v960_v31 = vadd.f32 %v3517_v47, %v809_v1 }
 0x10a   : > { %v944_v50 = vpop.f32.mrf.mxu0  ;;  %v4198_v51 = vpop.f32.mrf.mxu1 }
 0x10b   : > { %4478 = vst [vmem:[#allocation10_spill] sm:$0xff] %v4198_v51  ;;  %v1104_v21 = vadd.f32 %v3522_v36, %v954_v48  ;;  %v958_v24 = vadd.f32 %v3514_v43, %v807_v11  ;;  %v959_v43 = vadd.f32 %v944_v50, %v808_v18 }
 0x10c   : > { %v3536_v54 = vpop.f32.mrf.mxu0  ;;  %v3550_v55 = vpop.f32.mrf.mxu1 }
 0x10d   : > { %v1255_v13 = vadd.f32 %v3536_v54, %v1104_v21  ;;  %v1108_v28 = vadd.f32 %v3528_v44, %v958_v24 }
 0x10e   : > { %v1215_v58 = vpop.f32.mrf.mxu0  ;;  %v1366_v59 = vpop.f32.mrf.mxu1  ;;  %v4479_v41 = vld [vmem:[#allocation8_spill] sm:$0xff] }
 0x10f   : > { %v1254_v16 = vadd.f32 %v1215_v58, %v1103_v22  ;;  %v1406_v36 = vadd.f32 %v3550_v55, %v1255_v13  ;;  %v1107_v32 = vadd.f32 %v4479_v41, %v957_v26  ;;  %v4483_v41 = vld [vmem:[#allocation7_spill] sm:$0xff] }
 0x110   : > { %v3539_v0 = vpop.f32.mrf.mxu0  ;;  %v3553_v3 = vpop.f32.mrf.mxu1  ;;  %v4480_v34 = vld [vmem:[#allocation9_spill] sm:$0xff] }
 0x111   : > { %v1257_v17 = vadd.f32 %v3539_v0, %v1106_v15  ;;  %v1405_v33 = vadd.f32 %v1366_v59, %v1254_v16  ;;  %v1110_v44 = vadd.f32 %v4480_v34, %v960_v31 }
 0x112   : > { %v1225_v51 = vpop.f32.mrf.mxu0  ;;  %v1376_v9 = vpop.f32.mrf.mxu1 }
 0x113   : > { %v1256_v38 = vadd.f32 %v1225_v51, %v1105_v35  ;;  %v1408_v46 = vadd.f32 %v3553_v3, %v1257_v17  ;;  %v4481_v51 = vld [vmem:[#allocation10_spill] sm:$0xff] }
 0x114   : > { %v3542_v7 = vpop.f32.mrf.mxu0  ;;  %v3556_v27 = vpop.f32.mrf.mxu1  ;;  %v1109_v60 = vadd.f32 %v4481_v51, %v959_v43 }
 0x115   : > { %v1259_v45 = vadd.f32 %v3542_v7, %v1108_v28  ;;  %v1407_v55 = vadd.f32 %v1376_v9, %v1256_v38  ;;  %v4482_v38 = vld [vmem:[#allocation6_spill] sm:$0xff] }
 0x116   : > { %v1235_v20 = vpop.f32.mrf.mxu0  ;;  %v1386_v39 = vpop.f32.mrf.mxu1 }
 0x117   : > { %v1258_v47 = vadd.f32 %v1235_v20, %v1107_v32  ;;  %v1410_v61 = vadd.f32 %v3556_v27, %v1259_v45 }
 0x118   : > { %v3545_v2 = vpop.f32.mrf.mxu0  ;;  %v3559_v56 = vpop.f32.mrf.mxu1 }
 0x119   : > { %v1261_v62 = vadd.f32 %v3545_v2, %v1110_v44  ;;  %v1409_v5 = vadd.f32 %v1386_v39, %v1258_v47  ;;  %v1902_v44 = vld [vmem:[#allocation2 + $0x2] sm:$0xff] }
 0x11a   : > { %v1245_v29 = vpop.f32.mrf.mxu0  ;;  %v1396_v49 = vpop.f32.mrf.mxu1 }
 0x11b   : > { %v1260_v6 = vadd.f32 %v1245_v29, %v1109_v60  ;;  %v1412_v9 = vadd.f32 %v3559_v56, %v1261_v62 }
 0x11c   : > { %v3564_v37 = vpop.f32.mrf.mxu0 }
 0x11d   : > { %v1556_v40 = vadd.f32 %v3564_v37, %v1406_v36  ;;  %v1411_v23 = vadd.f32 %v1396_v49, %v1260_v6  ;;  %v2792_v6 = vld [vmem:[#allocation2 + $0x92] sm:$0xff] }
 0x11e   : > { %v1516_v42 = vpop.f32.mrf.mxu0 }
 0x11f   : > { %v1571_v48 = vadd.f32 %v3198_v30, %v1556_v40  ;;  %v1555_v53 = vadd.f32 %v1516_v42, %v1405_v33  ;;  %v3234_v33 = vld [vmem:[%s4467_s3 + $0x20] sm:$0xff] }
 0x120   : > { %v3567_v54 = vpop.f32.mrf.mxu0 }
 0x121   : > { %v1579_v57 = vmul.f32 0.2, %v1571_v48  ;;  %v1570_v58 = vadd.f32 %v3198_v30, %v1555_v53  ;;  %v1558_v59 = vadd.f32 %v3567_v54, %v1408_v46 }
 0x122   : > { %v1526_v63 = vpop.f32.mrf.mxu0 }
 0x123   : > { %v1587_v50 = vmax.f32 %v1571_v48, %v1579_v57  ;;  %v1578_v0 = vmul.f32 0.2, %v1570_v58  ;;  %v1573_v4 = vadd.f32 %v3198_v30, %v1558_v59  ;;  %v1557_v3 = vadd.f32 %v1526_v63, %v1407_v55  ;;  %v3252_v57 = vld [vmem:[%s4467_s3 + $0x30] sm:$0xff] }
 0x124   : > { %v3570_v19 = vpop.f32.mrf.mxu0 }
 0x125   : > { %1618 = vst.msk [vmem:[#allocation2 + $0x21] sm:$0xff] %vm1594_vm2, %v1587_v50  ;;  %v1586_v7 = vmax.f32 %v1570_v58, %v1578_v0  ;;  %v1581_v8 = vmul.f32 0.2, %v1573_v4  ;;  %v1572_v21 = vadd.f32 %v3198_v30, %v1557_v3  ;;  %v1560_v52 = vadd.f32 %v3570_v19, %v1410_v61  ;;  %v3261_v58 = vld [vmem:[%s4467_s3 + $0x38] sm:$0xff]  ;;  %v3270_v50 = vld [vmem:[%s4467_s3 + $0x40] sm:$0xff]  ;;  %v2498_v3 = vld [vmem:[#allocation2 + $0x90] sm:$0xff] }
 0x126   : > { %v1536_v10 = vpop.f32.mrf.mxu0 }
 0x127   : > { %1617 = vst.msk [vmem:[#allocation2 + $0x11] sm:$0xff] %vm1594_vm2, %v1586_v7  ;;  %v1589_v11 = vmax.f32 %v1573_v4, %v1581_v8  ;;  %v1580_v12 = vmul.f32 0.2, %v1572_v21  ;;  %v1575_v20 = vadd.f32 %v3198_v30, %v1560_v52  ;;  %v1559_v22 = vadd.f32 %v1536_v10, %v1409_v5  ;;  %v2645_v5 = vld [vmem:[#allocation2 + $0x91] sm:$0xff] }
 0x128   : > { %v3573_v13 = vpop.f32.mrf.mxu0 }
 0x129   : > { %1620 = vst.msk [vmem:[#allocation2 + $0x41] sm:$0xff] %vm1594_vm2, %v1589_v11  ;;  %v1588_v14 = vmax.f32 %v1572_v21, %v1580_v12  ;;  %v1583_v25 = vmul.f32 0.2, %v1575_v20  ;;  %v1574_v24 = vadd.f32 %v3198_v30, %v1559_v22  ;;  %v1562_v2 = vadd.f32 %v3573_v13, %v1412_v9 }
 0x12a   : > { %v1546_v15 = vpop.f32.mrf.mxu0 }
 0x12b   : > { %1619 = vst.msk [vmem:[#allocation2 + $0x31] sm:$0xff] %vm1594_vm2, %v1588_v14  ;;  %v1591_v16 = vmax.f32 %v1575_v20, %v1583_v25  ;;  %v1582_v27 = vmul.f32 0.2, %v1574_v24  ;;  %v1577_v1 = vadd.f32 %v3198_v30, %v1562_v2  ;;  %v1561_v26 = vadd.f32 %v1546_v15, %v1411_v23 }
 0x12c   : > { %v4221_v37 = vld [vmem:[#allocation2 + $0x21] sm:$0xff] }
 0x12d   : > { %1622 = vst.msk [vmem:[#allocation2 + $0x61] sm:$0xff] %vm1594_vm2, %v1591_v16  ;;  %v1590_v29 = vmax.f32 %v1574_v24, %v1582_v27  ;;  %v1585_v35 = vmul.f32 0.2, %v1577_v1  ;;  %v1576_v36 = vadd.f32 %v3198_v30, %v1561_v26  ;;  %v3243_v30 = vld [vmem:[%s4467_s3 + $0x28] sm:$0xff]  ;;  %v4232_v39 = vld [vmem:[#allocation2 + $0x20] sm:$0xff] }
 0x12e   : > { %v4215_v17 = vld [vmem:[#allocation2 + $0x11] sm:$0xff]  ;;  %v4284_v56 = vld [vmem:[#allocation2 + $0x22] sm:$0xff] }
 0x12f   : > { %v1626_v18 = vld [vmem:[#allocation2 + $0x10] sm:$0xff]  ;;  %1621 = vst.msk [vmem:[#allocation2 + $0x51] sm:$0xff] %vm1594_vm2, %v1590_v29  ;;  %v1593_v28 = vmax.f32 %v1577_v1, %v1585_v35  ;;  %v1584_v31 = vmul.f32 0.2, %v1576_v36  ;;  %3577 = vmatmul.mubr.msk.f32.vlgmr.msra.gmra.mxu1 %vm1594_vm2, %v4215_v17 }
 0x130   : > { %3591 = vmatmul.mubr.msk.f32.vlgmr.msra.gmra.mxu0 %vm1594_vm2, %v1626_v18  ;;  %3603 = vmatpush3.msra.mxu1 %v4482_v38  ;;  %v4247_v45 = vld [vmem:[#allocation2 + $0x41] sm:$0xff]  ;;  %v1903_v55 = vld [vmem:[#allocation2 + $0x12] sm:$0xff] }
 0x131   : > { %3579 = vmatprep.mubr.msk.f32.mxu1 %vm1594_vm2, %v4221_v37  ;;  %1624 = vst.msk [vmem:[#allocation2 + $0x81] sm:$0xff] %vm1594_vm2, %v1593_v28  ;;  %v1592_v40 = vmax.f32 %v1576_v36, %v1584_v31  ;;  %3593 = vmatprep.mubr.msk.f32.mxu0 %vm1594_vm2, %v4232_v39  ;;  %v4249_v42 = vld [vmem:[#allocation2 + $0x40] sm:$0xff] }
 0x132   : > { %3617 = vmatpush3.msra.mxu0 %v4483_v41  ;;  %v4238_v32 = vld [vmem:[#allocation2 + $0x31] sm:$0xff]  ;;  %3630 = vmatprep.subr.mxu1 %v3234_v33  ;;  %v1906_v51 = vld [vmem:[#allocation2 + $0x42] sm:$0xff] }
 0x133   : > { %v4240_v43 = vld [vmem:[#allocation2 + $0x30] sm:$0xff]  ;;  %3644 = vmatprep.subr.mxu0 %v3243_v30  ;;  %1623 = vst.msk [vmem:[#allocation2 + $0x71] sm:$0xff] %vm1594_vm2, %v1592_v40  ;;  %3580 = vmatmul.mubr.msk.f32.gmra.mxu1 %vm1594_vm2, %v4238_v32 }
 0x134   : > { %3594 = vmatmul.mubr.msk.f32.gmra.mxu0 %vm1594_vm2, %v4240_v43  ;;  %3582 = vmatprep.mubr.msk.f32.mxu1 %vm1594_vm2, %v4247_v45  ;;  %v4263_v53 = vld [vmem:[#allocation2 + $0x61] sm:$0xff]  ;;  %v1905_v59 = vld [vmem:[#allocation2 + $0x32] sm:$0xff] }
 0x135   : > { %3596 = vmatprep.mubr.msk.f32.mxu0 %vm1594_vm2, %v4249_v42  ;;  %v4265_v34 = vld [vmem:[#allocation2 + $0x60] sm:$0xff] }
 0x136   : > { %v4255_v46 = vld [vmem:[#allocation2 + $0x51] sm:$0xff]  ;;  %v1908_v61 = vld [vmem:[#allocation2 + $0x62] sm:$0xff] }
 0x137   : > { %v4257_v48 = vld [vmem:[#allocation2 + $0x50] sm:$0xff]  ;;  %3583 = vmatmul.mubr.msk.f32.gmra.mxu1 %vm1594_vm2, %v4255_v46 }
 0x138   : > { %3597 = vmatmul.mubr.msk.f32.gmra.mxu0 %vm1594_vm2, %v4257_v48  ;;  %3585 = vmatprep.mubr.msk.f32.mxu1 %vm1594_vm2, %v4263_v53  ;;  %v1907_v60 = vld [vmem:[#allocation2 + $0x52] sm:$0xff]  ;;  %v2056_v63 = vld [vmem:[#allocation2 + $0x80] sm:$0xff] }
 0x139   : > { %3599 = vmatprep.mubr.msk.f32.mxu0 %vm1594_vm2, %v4265_v34  ;;  %v2203_v0 = vld [vmem:[#allocation2 + $0x81] sm:$0xff] }
 0x13a   : > { %v4271_v47 = vld [vmem:[#allocation2 + $0x71] sm:$0xff]  ;;  %v2350_v4 = vld [vmem:[#allocation2 + $0x82] sm:$0xff] }
 0x13b   : > { %v4273_v54 = vld [vmem:[#allocation2 + $0x70] sm:$0xff]  ;;  %3586 = vmatmul.mubr.msk.f32.gmra.mxu1 %vm1594_vm2, %v4271_v47 }
 0x13c   : > { %3600 = vmatmul.mubr.msk.f32.gmra.mxu0 %vm1594_vm2, %v4273_v54  ;;  %3604 = vmatprep.mubr.msk.f32.mxu1 %vm1594_vm2, %v1902_v44  ;;  %v1909_v62 = vld [vmem:[#allocation2 + $0x72] sm:$0xff] }
 0x13d   : > { %3618 = vmatprep.mubr.msk.f32.mxu0 %vm1594_vm2, %v1626_v18 }
 0x13f   : > { %3605 = vmatmul.mubr.msk.f32.vlgmr.msra.gmra.mxu1 %vm1594_vm2, %v1903_v55 }
 0x140   : > { %3619 = vmatmul.mubr.msk.f32.vlgmr.msra.gmra.mxu0 %vm1594_vm2, %v4232_v39  ;;  %3631 = vmatpush3.msra.mxu1 %v3234_v33 }
 0x141   : > { %3607 = vmatprep.mubr.msk.f32.mxu1 %vm1594_vm2, %v4284_v56  ;;  %3621 = vmatprep.mubr.msk.f32.mxu0 %vm1594_vm2, %v4240_v43 }
 0x142   : > { %3645 = vmatpush3.msra.mxu0 %v3243_v30  ;;  %3658 = vmatprep.subr.mxu1 %v3252_v57 }
 0x143   : > { %3672 = vmatprep.subr.mxu0 %v3261_v58  ;;  %3608 = vmatmul.mubr.msk.f32.gmra.mxu1 %vm1594_vm2, %v1905_v59 }
 0x144   : > { %3622 = vmatmul.mubr.msk.f32.gmra.mxu0 %vm1594_vm2, %v4249_v42  ;;  %3610 = vmatprep.mubr.msk.f32.mxu1 %vm1594_vm2, %v1906_v51 }
 0x145   : > { %3624 = vmatprep.mubr.msk.f32.mxu0 %vm1594_vm2, %v4257_v48 }
 0x147   : > { %3611 = vmatmul.mubr.msk.f32.gmra.mxu1 %vm1594_vm2, %v1907_v60 }
 0x148   : > { %3625 = vmatmul.mubr.msk.f32.gmra.mxu0 %vm1594_vm2, %v4265_v34  ;;  %3613 = vmatprep.mubr.msk.f32.mxu1 %vm1594_vm2, %v1908_v61 }
 0x149   : > { %3627 = vmatprep.mubr.msk.f32.mxu0 %vm1594_vm2, %v4273_v54 }
 0x14b   : > { %3614 = vmatmul.mubr.msk.f32.gmra.mxu1 %vm1594_vm2, %v1909_v62 }
 0x14c   : > { %3628 = vmatmul.mubr.msk.f32.gmra.mxu0 %vm1594_vm2, %v2056_v63  ;;  %3632 = vmatprep.mubr.msk.f32.mxu1 %vm1594_vm2, %v4215_v17 }
 0x14d   : > { %3646 = vmatprep.mubr.msk.f32.mxu0 %vm1594_vm2, %v1903_v55 }
 0x14f   : > { %3633 = vmatmul.mubr.msk.f32.vlgmr.msra.gmra.mxu1 %vm1594_vm2, %v4221_v37 }
 0x150   : > { %3647 = vmatmul.mubr.msk.f32.vlgmr.msra.gmra.mxu0 %vm1594_vm2, %v4284_v56  ;;  %3659 = vmatpush3.msra.mxu1 %v3252_v57 }
 0x151   : > { %3635 = vmatprep.mubr.msk.f32.mxu1 %vm1594_vm2, %v4238_v32  ;;  %3649 = vmatprep.mubr.msk.f32.mxu0 %vm1594_vm2, %v1905_v59 }
 0x152   : > { %3673 = vmatpush3.msra.mxu0 %v3261_v58  ;;  %3686 = vmatprep.subr.mxu1 %v3270_v50 }
 0x153   : > { %3636 = vmatmul.mubr.msk.f32.gmra.mxu1 %vm1594_vm2, %v4247_v45 }
 0x154   : > { %3650 = vmatmul.mubr.msk.f32.gmra.mxu0 %vm1594_vm2, %v1906_v51  ;;  %3638 = vmatprep.mubr.msk.f32.mxu1 %vm1594_vm2, %v4255_v46 }
 0x155   : > { %3652 = vmatprep.mubr.msk.f32.mxu0 %vm1594_vm2, %v1907_v60 }
 0x157   : > { %3639 = vmatmul.mubr.msk.f32.gmra.mxu1 %vm1594_vm2, %v4263_v53 }
 0x158   : > { %3653 = vmatmul.mubr.msk.f32.gmra.mxu0 %vm1594_vm2, %v1908_v61  ;;  %3641 = vmatprep.mubr.msk.f32.mxu1 %vm1594_vm2, %v4271_v47 }
 0x159   : > { %3655 = vmatprep.mubr.msk.f32.mxu0 %vm1594_vm2, %v1909_v62 }
 0x15b   : > { %3642 = vmatmul.mubr.msk.f32.gmra.mxu1 %vm1594_vm2, %v2203_v0 }
 0x15c   : > { %3656 = vmatmul.mubr.msk.f32.gmra.mxu0 %vm1594_vm2, %v2350_v4  ;;  %3660 = vmatprep.mubr.msk.f32.mxu1 %vm1594_vm2, %v4232_v39 }
 0x15d   : > { %3674 = vmatprep.mubr.msk.f32.mxu0 %vm1594_vm2, %v4221_v37 }
 0x15f   : > { %3661 = vmatmul.mubr.msk.f32.vlgmr.msra.gmra.mxu1 %vm1594_vm2, %v4240_v43 }
 0x160   : > { %3675 = vmatmul.mubr.msk.f32.vlgmr.msra.gmra.mxu0 %vm1594_vm2, %v4238_v32  ;;  %3687 = vmatpush3.msra.mxu1 %v3270_v50 }
 0x161   : > { %3663 = vmatprep.mubr.msk.f32.mxu1 %vm1594_vm2, %v4249_v42  ;;  %3677 = vmatprep.mubr.msk.f32.mxu0 %vm1594_vm2, %v4247_v45 }
 0x163   : > { %3664 = vmatmul.mubr.msk.f32.gmra.mxu1 %vm1594_vm2, %v4257_v48 }
 0x164   : > { %3678 = vmatmul.mubr.msk.f32.gmra.mxu0 %vm1594_vm2, %v4255_v46  ;;  %3666 = vmatprep.mubr.msk.f32.mxu1 %vm1594_vm2, %v4265_v34 }
 0x165   : > { %3680 = vmatprep.mubr.msk.f32.mxu0 %vm1594_vm2, %v4263_v53 }
 0x167   : > { %3667 = vmatmul.mubr.msk.f32.gmra.mxu1 %vm1594_vm2, %v4273_v54 }
 0x168   : > { %3681 = vmatmul.mubr.msk.f32.gmra.mxu0 %vm1594_vm2, %v4271_v47  ;;  %3669 = vmatprep.mubr.msk.f32.mxu1 %vm1594_vm2, %v2056_v63 }
 0x169   : > { %3683 = vmatprep.mubr.msk.f32.mxu0 %vm1594_vm2, %v2203_v0 }
 0x16b   : > { %3670 = vmatmul.mubr.msk.f32.gmra.mxu1 %vm1594_vm2, %v2498_v3 }
 0x16c   : > { %3684 = vmatmul.mubr.msk.f32.gmra.mxu0 %vm1594_vm2, %v2645_v5  ;;  %3688 = vmatprep.mubr.msk.f32.mxu1 %vm1594_vm2, %v4284_v56 }
 0x16f   : > { %3689 = vmatmul.mubr.msk.f32.vlgmr.msra.gmra.mxu1 %vm1594_vm2, %v1905_v59 }
 0x170   : > { %3691 = vmatprep.mubr.msk.f32.mxu1 %vm1594_vm2, %v1906_v51 }
 0x173   : > { %3692 = vmatmul.mubr.msk.f32.gmra.mxu1 %vm1594_vm2, %v1907_v60 }
 0x174   : > { %3694 = vmatprep.mubr.msk.f32.mxu1 %vm1594_vm2, %v1908_v61 }
 0x177   : > { %3695 = vmatmul.mubr.msk.f32.gmra.mxu1 %vm1594_vm2, %v1909_v62 }
 0x178   : > { %3697 = vmatprep.mubr.msk.f32.mxu1 %vm1594_vm2, %v2350_v4 }
 0x17b   : > { %3698 = vmatmul.mubr.msk.f32.gmra.mxu1 %vm1594_vm2, %v2792_v6 }
 0x1ef   : > { %v3578_v19 = vpop.f32.mrf.mxu1 }
 0x1f0   : > { %v3592_v49 = vpop.f32.mrf.mxu0 }
 0x1f1   : > { %v1734_v7 = vpop.f32.mrf.mxu1  ;;  %v1869_v47 = vadd.f32 %v3592_v49, %v3578_v19 }
 0x1f2   : > { %v1863_v8 = vpop.f32.mrf.mxu0 }
 0x1f3   : > { %v3581_v21 = vpop.f32.mrf.mxu1  ;;  %v1864_v56 = vadd.f32 %v1863_v8, %v1734_v7 }
 0x1f4   : > { %v3595_v52 = vpop.f32.mrf.mxu0 }
 0x1f5   : > { %v1744_v9 = vpop.f32.mrf.mxu1  ;;  %v1879_v51 = vadd.f32 %v3595_v52, %v3581_v21 }
 0x1f6   : > { %v1873_v10 = vpop.f32.mrf.mxu0 }
 0x1f7   : > { %v3584_v11 = vpop.f32.mrf.mxu1  ;;  %v1874_v62 = vadd.f32 %v1873_v10, %v1744_v9 }
 0x1f8   : > { %v3598_v12 = vpop.f32.mrf.mxu0 }
 0x1f9   : > { %v1754_v20 = vpop.f32.mrf.mxu1  ;;  %v1889_v4 = vadd.f32 %v3598_v12, %v3584_v11 }
 0x1fa   : > { %v1883_v22 = vpop.f32.mrf.mxu0 }
 0x1fb   : > { %v3587_v23 = vpop.f32.mrf.mxu1  ;;  %v1884_v19 = vadd.f32 %v1883_v22, %v1754_v20 }
 0x1fc   : > { %v3601_v13 = vpop.f32.mrf.mxu0 }
 0x1fd   : > { %v4374_v14 = vpop.f32.mrf.mxu1 }
 0x1fe   : > { %v1893_v25 = vpop.f32.mrf.mxu0 }
 0x1ff   : > { %v3606_v24 = vpop.f32.mrf.mxu1  ;;  %v1894_v10 = vadd.f32 %v1893_v25, %v4374_v14 }
 0x200   : > { %v3620_v2 = vpop.f32.mrf.mxu0  ;;  %v2042_v57 = vadd.f32 %v3606_v24, %v1869_v47  ;;  %v1899_v24 = vadd.f32 %v3601_v13, %v3587_v23 }
 0x201   : > { %v2002_v15 = vpop.f32.mrf.mxu1 }
 0x202   : > { %v2149_v16 = vpop.f32.mrf.mxu0  ;;  %v2041_v60 = vadd.f32 %v2002_v15, %v1864_v56  ;;  %v2189_v63 = vadd.f32 %v3620_v2, %v2042_v57 }
 0x203   : > { %v3609_v27 = vpop.f32.mrf.mxu1 }
 0x204   : > { %v3623_v1 = vpop.f32.mrf.mxu0  ;;  %v2044_v50 = vadd.f32 %v3609_v27, %v1879_v51  ;;  %v2188_v5 = vadd.f32 %v2149_v16, %v2041_v60 }
 0x205   : > { %v2012_v26 = vpop.f32.mrf.mxu1 }
 0x206   : > { %v2159_v29 = vpop.f32.mrf.mxu0  ;;  %v2043_v6 = vadd.f32 %v2012_v26, %v1874_v62 }
 0x207   : > { %v3612_v35 = vpop.f32.mrf.mxu1 }
 0x208   : > { %v3626_v36 = vpop.f32.mrf.mxu0  ;;  %v2046_v49 = vadd.f32 %v3612_v35, %v1889_v4  ;;  %v2190_v52 = vadd.f32 %v2159_v29, %v2043_v6 }
 0x209   : > { %v2022_v17 = vpop.f32.mrf.mxu1 }
 0x20a   : > { %v2169_v18 = vpop.f32.mrf.mxu0  ;;  %v2045_v47 = vadd.f32 %v2022_v17, %v1884_v19  ;;  %v2193_v2 = vadd.f32 %v3626_v36, %v2046_v49 }
 0x20b   : > { %v3615_v28 = vpop.f32.mrf.mxu1 }
 0x20c   : > { %v3629_v31 = vpop.f32.mrf.mxu0  ;;  %v2048_v11 = vadd.f32 %v3615_v28, %v1899_v24  ;;  %v2192_v22 = vadd.f32 %v2169_v18, %v2045_v47 }
 0x20d   : > { %v2032_v37 = vpop.f32.mrf.mxu1 }
 0x20e   : > { %v4376_v33 = vpop.f32.mrf.mxu0  ;;  %v2195_v17 = vadd.f32 %v3629_v31, %v2048_v11 }
 0x20f   : > { %v3634_v30 = vpop.f32.mrf.mxu1 }
 0x210   : > { %v3648_v38 = vpop.f32.mrf.mxu0 }
 0x211   : > { %v2296_v39 = vpop.f32.mrf.mxu1 }
 0x212   : > { %v2443_v40 = vpop.f32.mrf.mxu0  ;;  %v2335_v7 = vadd.f32 %v2296_v39, %v2188_v5 }
 0x213   : > { %v3637_v41 = vpop.f32.mrf.mxu1 }
 0x214   : > { %v3651_v32 = vpop.f32.mrf.mxu0  ;;  %v2482_v16 = vadd.f32 %v2443_v40, %v2335_v7 }
 0x215   : > { %v2306_v43 = vpop.f32.mrf.mxu1 }
 0x216   : > { %v2453_v45 = vpop.f32.mrf.mxu0  ;;  %v2337_v27 = vadd.f32 %v2306_v43, %v2190_v52 }
 0x217   : > { %v3640_v42 = vpop.f32.mrf.mxu1 }
 0x218   : > { %v3654_v46 = vpop.f32.mrf.mxu0  ;;  %v2340_v35 = vadd.f32 %v3640_v42, %v2193_v2  ;;  %v2484_v39 = vadd.f32 %v2453_v45, %v2337_v27 }
 0x219   : > { %v2316_v48 = vpop.f32.mrf.mxu1 }
 0x21a   : > { %v4378_v53 = vpop.f32.mrf.mxu0  ;;  %v2339_v29 = vadd.f32 %v2316_v48, %v2192_v22  ;;  %v2487_v28 = vadd.f32 %v3654_v46, %v2340_v35 }
 0x21b   : > { %4484 = vst [vmem:[#allocation8_spill] sm:$0xff] %v4378_v53  ;;  %v3643_v34 = vpop.f32.mrf.mxu1 }
 0x21c   : > { %v4380_v44 = vpop.f32.mrf.mxu0  ;;  %v2342_v40 = vadd.f32 %v3643_v34, %v2195_v17 }
 0x21d   : > { %4485 = vst [vmem:[#allocation9_spill] sm:$0xff] %v4380_v44  ;;  %v2326_v54 = vpop.f32.mrf.mxu1  ;;  %v2336_v44 = vadd.f32 %v3634_v30, %v2189_v63 }
 0x21e   : > { %v4382_v55 = vpop.f32.mrf.mxu0 }
 0x21f   : > { %4486 = vst [vmem:[#allocation10_spill] sm:$0xff] %v4382_v55  ;;  %v3662_v58 = vpop.f32.mrf.mxu1  ;;  %v2191_v55 = vadd.f32 %v3623_v1, %v2044_v50  ;;  %v2483_v15 = vadd.f32 %v3648_v38, %v2336_v44  ;;  %v2047_v1 = vadd.f32 %v2032_v37, %v1894_v10  ;;  %v3279_v37 = vld [vmem:[%s4468_s4] ss:$0 sm:$0xff] }
 0x220   : > { %v3676_v59 = vpop.f32.mrf.mxu0 }
 0x221   : > { %v2591_v61 = vpop.f32.mrf.mxu1  ;;  %v2338_v9 = vadd.f32 %v3637_v41, %v2191_v55  ;;  %v2631_v26 = vadd.f32 %v3662_v58, %v2483_v15  ;;  %v2194_v36 = vadd.f32 %v4376_v33, %v2047_v1 }
 0x222   : > { %v2738_v0 = vpop.f32.mrf.mxu0  ;;  %v2630_v13 = vadd.f32 %v2591_v61, %v2482_v16  ;;  %v4487_v42 = vld [vmem:[#allocation8_spill] sm:$0xff] }
 0x223   : > { %v3665_v3 = vpop.f32.mrf.mxu1  ;;  %v2485_v23 = vadd.f32 %v3651_v32, %v2338_v9  ;;  %v2778_v41 = vadd.f32 %v3676_v59, %v2631_v26  ;;  %v2486_v48 = vadd.f32 %v4487_v42, %v2339_v29  ;;  %v2341_v45 = vadd.f32 %v2326_v54, %v2194_v36 }
 0x224   : > { %v3679_v8 = vpop.f32.mrf.mxu0  ;;  %v2777_v32 = vadd.f32 %v2738_v0, %v2630_v13  ;;  %v4488_v34 = vld [vmem:[#allocation9_spill] sm:$0xff] }
 0x225   : > { %v2601_v53 = vpop.f32.mrf.mxu1  ;;  %v2633_v14 = vadd.f32 %v3665_v3, %v2485_v23  ;;  %v2489_v58 = vadd.f32 %v4488_v34, %v2342_v40 }
 0x226   : > { %v2748_v20 = vpop.f32.mrf.mxu0  ;;  %v2632_v43 = vadd.f32 %v2601_v53, %v2484_v39  ;;  %v4489_v50 = vld [vmem:[#allocation10_spill] sm:$0xff] }
 0x227   : > { %v3668_v21 = vpop.f32.mrf.mxu1  ;;  %v2780_v56 = vadd.f32 %v3679_v8, %v2633_v14  ;;  %v2488_v0 = vadd.f32 %v4489_v50, %v2341_v45 }
 0x228   : > { %v3682_v25 = vpop.f32.mrf.mxu0  ;;  %v2635_v44 = vadd.f32 %v3668_v21, %v2487_v28  ;;  %v2779_v60 = vadd.f32 %v2748_v20, %v2632_v43 }
 0x229   : > { %v2611_v12 = vpop.f32.mrf.mxu1 }
 0x22a   : > { %v2758_v57 = vpop.f32.mrf.mxu0  ;;  %v2634_v59 = vadd.f32 %v2611_v12, %v2486_v48  ;;  %v2782_v54 = vadd.f32 %v3682_v25, %v2635_v44 }
 0x22b   : > { %v3671_v30 = vpop.f32.mrf.mxu1 }
 0x22c   : > { %v3685_v61 = vpop.f32.mrf.mxu0  ;;  %v2637_v4 = vadd.f32 %v3671_v30, %v2489_v58  ;;  %v2781_v7 = vadd.f32 %v2758_v57, %v2634_v59 }
 0x22d   : > { %v2621_v38 = vpop.f32.mrf.mxu1 }
 0x22e   : > { %v2636_v8 = vadd.f32 %v2621_v38, %v2488_v0  ;;  %v2768_v47 = vpop.f32.mrf.mxu0  ;;  %v2784_v10 = vadd.f32 %v3685_v61, %v2637_v4 }
 0x22f   : > { %v3690_v18 = vpop.f32.mrf.mxu1 }
 0x230   : > { %v2925_v31 = vadd.f32 %v3690_v18, %v2778_v41  ;;  %v2783_v26 = vadd.f32 %v2768_v47, %v2636_v8 }
 0x231   : > { %v2885_v55 = vpop.f32.mrf.mxu1 }
 0x232   : > { %v2940_v33 = vadd.f32 %v3279_v37, %v2925_v31  ;;  %v2924_v46 = vadd.f32 %v2885_v55, %v2777_v32 }
 0x233   : > { %v3693_v51 = vpop.f32.mrf.mxu1 }
 0x234   : > { %v2948_v62 = vmul.f32 0.2, %v2940_v33  ;;  %v2939_v53 = vadd.f32 %v3279_v37, %v2924_v46  ;;  %v2927_v63 = vadd.f32 %v3693_v51, %v2780_v56 }
 0x235   : > { %v2895_v3 = vpop.f32.mrf.mxu1 }
 0x236   : > { %v2956_v5 = vmax.f32 %v2940_v33, %v2948_v62  ;;  %v2947_v6 = vmul.f32 0.2, %v2939_v53  ;;  %v2942_v19 = vadd.f32 %v3279_v37, %v2927_v63  ;;  %v2926_v49 = vadd.f32 %v2895_v3, %v2779_v60 }
 0x237   : > { %v3696_v24 = vpop.f32.mrf.mxu1 }
 0x238   : > { %2964 = vst.msk [vmem:[%s4395_s26 + $0x8] sm:$0xff] %vm1594_vm2, %v2956_v5  ;;  %v2955_v21 = vmax.f32 %v2939_v53, %v2947_v6  ;;  %v2950_v52 = vmul.f32 0.2, %v2942_v19  ;;  %v2941_v15 = vadd.f32 %v3279_v37, %v2926_v49  ;;  %v2929_v9 = vadd.f32 %v3696_v24, %v2782_v54 }
 0x239   : > { %v2905_v2 = vpop.f32.mrf.mxu1 }
 0x23a   : > { %2963 = vst.msk [vmem:[%s4395_s26] sm:$0xff] %vm1594_vm2, %v2955_v21  ;;  %v2958_v11 = vmax.f32 %v2942_v19, %v2950_v52  ;;  %v2949_v12 = vmul.f32 0.2, %v2941_v15  ;;  %v2944_v16 = vadd.f32 %v3279_v37, %v2929_v9  ;;  %v2928_v27 = vadd.f32 %v2905_v2, %v2781_v7 }
 0x23b   : > { %v3699_v20 = vpop.f32.mrf.mxu1 }
 0x23c   : > { %2966 = vst.msk [vmem:[%s4395_s26 + $0x18] sm:$0xff] %vm1594_vm2, %v2958_v11  ;;  %v2957_v22 = vmax.f32 %v2941_v15, %v2949_v12  ;;  %v2952_v1 = vmul.f32 0.2, %v2944_v16  ;;  %v2943_v35 = vadd.f32 %v3279_v37, %v2928_v27  ;;  %v2931_v30 = vadd.f32 %v3699_v20, %v2784_v10 }
 0x23d   : > { %v2915_v23 = vpop.f32.mrf.mxu1 }
 0x23e   : > { %2965 = vst.msk [vmem:[%s4395_s26 + $0x10] sm:$0xff] %vm1594_vm2, %v2957_v22  ;;  %v2960_v13 = vmax.f32 %v2944_v16, %v2952_v1  ;;  %v2951_v17 = vmul.f32 0.2, %v2943_v35  ;;  %v2946_v29 = vadd.f32 %v3279_v37, %v2931_v30  ;;  %v2930_v38 = vadd.f32 %v2915_v23, %v2783_v26 }
 0x240   : > { %2968 = vst.msk [vmem:[%s4395_s26 + $0x28] sm:$0xff] %vm1594_vm2, %v2960_v13  ;;  %v2959_v39 = vmax.f32 %v2943_v35, %v2951_v17  ;;  %v2954_v41 = vmul.f32 0.2, %v2946_v29  ;;  %v2945_v14 = vadd.f32 %v3279_v37, %v2930_v38 }
 0x242   : > { %2967 = vst.msk [vmem:[%s4395_s26 + $0x20] sm:$0xff] %vm1594_vm2, %v2959_v39  ;;  %v2962_v25 = vmax.f32 %v2946_v29, %v2954_v41  ;;  %v2953_v36 = vmul.f32 0.2, %v2945_v14 }
 0x244   : > { %2970 = vst.msk [vmem:[%s4395_s26 + $0x38] sm:$0xff] %vm1594_vm2, %v2962_v25  ;;  %v2961_v28 = vmax.f32 %v2945_v14, %v2953_v36 }
 0x246   : > { %2969 = vst.msk [vmem:[%s4395_s26 + $0x30] sm:$0xff] %vm1594_vm2, %v2961_v28 }
 0x247   : > { %3756 = shalt.err (!%p3753_p3)
}
 0x248   : > { %s3757_s14 = scalar_lea.hbm %s4414_s9, 1024  ;;  %s3761_s17 = scalar_lea.hbm %s4469_s5, 2048 }
 0x249   : > { %p3758_p4 = scmp.ne.s32.totalorder %s4414_s9, %s3757_s14  ;;  %p3762_p9 = scmp.lt.s32.totalorder %s4414_s9, %s4469_s5 }
 0x24a   : > { %p3763_p10 = scmp.lt.s32.totalorder %s3761_s17, %s3757_s14 }
 0x24b   : > { %p3759_p7 = pnand %p3758_p4, %p3877_p5 }
 0x24c   : > { %p3764_p11 = por %p3763_p10, %p3762_p9 }
 0x24d   : > { %p3760_p8 = pneg %p3759_p7 }
 0x24f   : > { %p3765_p12 = pnand %p3764_p11, %p3760_p8 }
 0x251   : > { %3768 = shalt.err (!%p3765_p12)
}
 0x252   : > { %s3807_s26 = smov 128   ;;  %s3808_s30 = smov 8  }
 0x253   : > { %3701 = dma.vmem_to_hbm [thread:$0]  (%p3877_p5), %s4416_s6, 1024, %s4414_s9, %s4424_s22, %s3807_s26, %s3807_s26, %s3808_s30  }
 0x254 PF: > { %p3707_p13 = scmp.ge.s32.totalorder %s3803_s21, 2  ;;  %s3000_s7 = sand.u32 1, %s3791_s18  }
 0x255   : > { %s3001_s8 = scalar_lea.sflag [#allocation4], %s3000_s7 }
 0x256   : > { %p3704_p0 = pnand %p3707_p13, %p3881_p6 }
 0x258   : > { %p3705_p1 = pneg %p3704_p0 }
 0x25a   : > { %3786 = dma.done.wait (%p3705_p1), %s3001_s8, 1024  }
 0x25b   : > { %3788 = vsyncadd (%p3705_p1), %s3001_s8, 4294966272  ;;  %p15_p2 = scmp.ge.s32.totalorder %s3864_s24, 4   ;;  %s4490_s18 = smov %s3795_s19 }
 0x25c   : > { %s4491_s19 = smov %s3799_s20  ;;  %s4492_s20 = smov %s3875_s27 }
 0x25d   : > { %s4493_s21 = smov %s3864_s24  ;;  %17 = sbr.rel (!%p15_p2) target bundleno = 3 (0x3), region = 98 }
 0x262   :  { %3006 = vsyncpa [#allocation4], 1 }
 0x263   :  { %3008 = vsyncpa [#allocation4 + $0x1], 1 }

</bundles_post_ra>
